<compile_context>
chip_gen: v7x
topology: tpu7x:2x2x1
jax: 0.10.0
libtpu: 0.0.40
codegen_flags: <defaults>
</compile_context>

<pallas_src>
import functools

import jax
import jax.numpy as jnp
from jax.experimental import pallas as pl
from jax.experimental.pallas import tpu as pltpu

LEAKY_SLOPE = 0.1
BN_EPS = 1e-5
SUBLANE = 8  # f32 sublane tile


def _block_kernel(x_ref, w_ref, b_ref, m_ref, out_ref, patch_ref, *, W):
    """Fused 3x(conv3x3 + BN + LeakyReLU) + residual.

    x_ref    : (1, Cp, L)     input; channels on sublanes, L = Bs*H*W on lanes
    w_ref    : (3, Cp, 9*Cp)  BN-scale-folded conv weights per stage
    b_ref    : (3, Cp, 1)     folded BN bias per stage (lane-broadcast here)
    m_ref    : (9, L)         per-tap shift-validity mask (shared across Cin)
    out_ref  : (1, Cp, L)
    patch_ref: (9*Cp, L)      VMEM scratch staging the im2col patch
    """
    Cp = x_ref.shape[1]
    L = x_ref.shape[2]
    offs = [(kh - 1) * W + (kw - 1) for kh in range(3) for kw in range(3)]

    x0 = x_ref[0]          # (Cp, L) f32
    masks = m_ref[...]     # (9, L)  f32

    def conv_bn(a, s):
        # Build the 9 shifted windows with lane rotations (XLU), zero the
        # cross-edge / cross-image wrap contributions (mask broadcast over the
        # Cp sublanes; center tap is always valid), stage into VMEM scratch,
        # then ONE (Cp, 9*Cp) @ (9*Cp, L) MXU contraction.
        for t, off in enumerate(offs):
            sh = (-off) % L
            tap = a if sh == 0 else pltpu.roll(a, sh, 1)
            if off != 0:
                tap = tap * masks[t:t + 1, :]
            patch_ref[t * Cp:(t + 1) * Cp, :] = tap
        y = jnp.dot(w_ref[s], patch_ref[...],
                    preferred_element_type=jnp.float32)        # (Cp, L)
        return y + b_ref[s]                                    # (Cp,1) lane broadcast

    def lrelu(v):
        return jnp.maximum(v, jnp.float32(LEAKY_SLOPE) * v)

    h = lrelu(conv_bn(x0, 0))
    h = lrelu(conv_bn(h, 1))
    h = lrelu(conv_bn(h, 2) + x0)   # residual add before final LeakyReLU
    # MaxPool2d(kernel=stride=1) is the identity; drop_rate==0 -> no dropout.
    out_ref[0] = h.astype(out_ref.dtype)


def _grid_steps(N):
    """One grid step per TensorCore: 2 on v7x, 1 on v5e/v6e (batch folded)."""
    n_tc = 1
    try:
        if "v7" in jax.devices()[0].device_kind.lower():
            n_tc = 2
    except Exception:  # pragma: no cover - conservative fallback
        pass
    return n_tc if (n_tc > 1 and N % n_tc == 0) else 1


def basic_block_forward(x_nchw, params):
    """BasicBlock forward (eval mode, stride=1, downsample=None, drop_rate=0)."""
    N, C, H, W = x_nchw.shape
    P = H * W
    Cp = ((C + SUBLANE - 1) // SUBLANE) * SUBLANE   # pad channels to sublane tile

    G = _grid_steps(N)   # grid steps; on single-TC chips batch folds onto lanes
    Bs = N // G          # batch elements per grid step (folded on lane axis)
    L = Bs * P

    # ---- fold BN into conv weights / bias, pad channels, pack per stage ----
    w_list, b_list = [], []
    for i in (1, 2, 3):
        gamma, beta, mean, var = params[f"bn{i}"]
        scale = gamma / jnp.sqrt(var + BN_EPS)                # (C,)
        bias = beta - mean * scale                            # (C,)
        w = params[f"w{i}"].astype(jnp.float32) * scale[:, None, None, None]
        w = jnp.pad(w, ((0, Cp - C), (0, Cp - C), (0, 0), (0, 0)))
        # (O, I, 3, 3) -> (O, kh, kw, I) -> (O, 9*I); K index = (kh*3+kw)*Cp + ci
        w_list.append(jnp.transpose(w, (0, 2, 3, 1)).reshape(Cp, 9 * Cp))
        b_list.append(jnp.pad(bias.astype(jnp.float32), (0, Cp - C)))
    w_all = jnp.stack(w_list)                 # (3, Cp, 9*Cp)
    b_all = jnp.stack(b_list)[:, :, None]     # (3, Cp, 1)  lane-broadcast in-kernel

    # ---- per-tap validity masks (zero-padded conv), shared across Cin ----
    rows = jnp.arange(P, dtype=jnp.int32) // W
    cols = jnp.arange(P, dtype=jnp.int32) % W
    mask_rows = []
    for kh in range(3):
        for kw in range(3):
            dh, dw = kh - 1, kw - 1
            valid = ((rows + dh >= 0) & (rows + dh < H) &
                     (cols + dw >= 0) & (cols + dw < W)).astype(jnp.float32)
            mask_rows.append(valid)
    masks = jnp.tile(jnp.stack(mask_rows), (1, Bs))           # (9, L)

    # ---- input: channels on sublanes, batch folded + spatial on lanes ----
    x = jnp.pad(x_nchw.astype(jnp.float32).reshape(N, C, P),
                ((0, 0), (0, Cp - C), (0, 0)))                # (N, Cp, P)
    x = x.reshape(G, Bs, Cp, P).transpose(0, 2, 1, 3).reshape(G, Cp, L)

    out = pl.pallas_call(
        functools.partial(_block_kernel, W=W),
        out_shape=jax.ShapeDtypeStruct((G, Cp, L), jnp.float32),
        grid=(G,),
        in_specs=[
            pl.BlockSpec((1, Cp, L), lambda g: (g, 0, 0)),
            pl.BlockSpec((3, Cp, 9 * Cp), lambda g: (0, 0, 0)),
            pl.BlockSpec((3, Cp, 1), lambda g: (0, 0, 0)),
            pl.BlockSpec((9, L), lambda g: (0, 0)),
        ],
        out_specs=pl.BlockSpec((1, Cp, L), lambda g: (g, 0, 0)),
        scratch_shapes=[pltpu.VMEM((9 * Cp, L), jnp.float32)],
        compiler_params=pltpu.CompilerParams(
            dimension_semantics=("parallel",)),
    )(x, w_all, b_all, masks)

    # unfold batch, drop channel padding, restore NCHW spatial shape
    out = out.reshape(G, Cp, Bs, P).transpose(0, 2, 1, 3).reshape(N, Cp, P)
    return out[:, :C, :].reshape(N, C, H, W).astype(x_nchw.dtype)


# ----------------------- pure-JAX reference (for check) -----------------------
def _ref_forward(x_nchw, params):
    def conv(x, w):  # w: (O, I, 3, 3), NCHW
        return jax.lax.conv_general_dilated(
            x, w, (1, 1), ((1, 1), (1, 1)),
            dimension_numbers=("NCHW", "OIHW", "NCHW"))

    def bn(x, gamma, beta, mean, var):
        s = gamma / jnp.sqrt(var + BN_EPS)
        b = beta - mean * s
        return x * s[None, :, None, None] + b[None, :, None, None]

    def lrelu(x):
        return jnp.where(x > 0, x, LEAKY_SLOPE * x)

    out = lrelu(bn(conv(x_nchw, params["w1"]), *params["bn1"]))
    out = lrelu(bn(conv(out, params["w2"]), *params["bn2"]))
    out = lrelu(bn(conv(out, params["w3"]), *params["bn3"]) + x_nchw)
    return out  # MaxPool2d(1) identity, drop_rate=0


if __name__ == "__main__":
    # Small shapes consistent with the module: inplanes = planes = 4
    N, C, H, W = 2, 4, 16, 16

    key = jax.random.PRNGKey(0)
    keys = jax.random.split(key, 8)

    def bn_params(k):
        kg, kb, km, kv = jax.random.split(k, 4)
        gamma = 1.0 + 0.1 * jax.random.normal(kg, (C,), jnp.float32)
        beta = 0.1 * jax.random.normal(kb, (C,), jnp.float32)
        mean = 0.05 * jax.random.normal(km, (C,), jnp.float32)
        var = 1.0 + 0.1 * jax.random.uniform(kv, (C,), jnp.float32)
        return (gamma, beta, mean, var)

    params = {
        "w1": 0.2 * jax.random.normal(keys[0], (C, C, 3, 3), jnp.float32),
        "w2": 0.2 * jax.random.normal(keys[1], (C, C, 3, 3), jnp.float32),
        "w3": 0.2 * jax.random.normal(keys[2], (C, C, 3, 3), jnp.float32),
        "bn1": bn_params(keys[3]),
        "bn2": bn_params(keys[4]),
        "bn3": bn_params(keys[5]),
    }

    x = jax.random.normal(keys[6], (N, C, H, W), jnp.float32)

    out = jax.block_until_ready(basic_block_forward(x, params))
    ref = jax.block_until_ready(_ref_forward(x, params))

    assert out.shape == (N, C, H, W)
    assert jnp.allclose(out, ref, atol=1e-4, rtol=1e-4), "mismatch vs reference"

    print("KERNEL_OK")
</pallas_src>

<mosaic_0001>
module attributes {stable_mosaic.version = 11 : i64} {
  func.func @_block_kernel(%arg0: i32, %arg1: memref<1x8x512xf32, #tpu.memory_space<vmem>>, %arg2: memref<3x8x72xf32, #tpu.memory_space<vmem>>, %arg3: memref<3x8x1xf32, #tpu.memory_space<vmem>>, %arg4: memref<9x512xf32, #tpu.memory_space<vmem>>, %arg5: memref<1x8x512xf32, #tpu.memory_space<vmem>>, %arg6: memref<72x512xf32, #tpu.memory_space<vmem>>) attributes {dimension_semantics = [#tpu.dimension_semantics<parallel>], iteration_bounds = array<i64: 1>, scalar_prefetch = 0 : i64, scratch_operands = 1 : i64, tpu.core_type = #tpu.core_type<tc>, window_params = [{transform_indices = @transform_0, window_bounds = array<i64: 1, 8, 512>}, {pipeline_mode = #tpu.pipeline_mode<synchronous>, transform_indices = @transform_1, window_bounds = array<i64: 3, 8, 72>}, {pipeline_mode = #tpu.pipeline_mode<synchronous>, transform_indices = @transform_2, window_bounds = array<i64: 3, 8, 1>}, {pipeline_mode = #tpu.pipeline_mode<synchronous>, transform_indices = @transform_3, window_bounds = array<i64: 9, 512>}, {transform_indices = @transform_4, window_bounds = array<i64: 1, 8, 512>}]} {
    %c0 = arith.constant 0 : index
    %c0_0 = arith.constant 0 : index
    %c0_1 = arith.constant 0 : index
    %0 = vector.load %arg1[%c0, %c0_0, %c0_1] : memref<1x8x512xf32, #tpu.memory_space<vmem>>, vector<1x8x512xf32>
    %1 = vector.shape_cast %0 : vector<1x8x512xf32> to vector<8x512xf32>
    %c0_2 = arith.constant 0 : index
    %c0_3 = arith.constant 0 : index
    %2 = vector.load %arg4[%c0_2, %c0_3] : memref<9x512xf32, #tpu.memory_space<vmem>>, vector<9x512xf32>
    %c17_i32 = arith.constant 17 : i32
    %3 = tpu.dynamic_rotate %1 by %c17_i32 dim 1 : vector<8x512xf32>, i32 -> vector<8x512xf32>
    %4 = vector.extract_strided_slice %2 {offsets = [0, 0], sizes = [1, 512], strides = [1, 1]} : vector<9x512xf32> to vector<1x512xf32>
    %5 = vector.broadcast %4 : vector<1x512xf32> to vector<8x512xf32>
    %6 = arith.mulf %3, %5 : vector<8x512xf32>
    %c0_4 = arith.constant 0 : index
    %c0_5 = arith.constant 0 : index
    %7 = vector.load %arg6[%c0_4, %c0_5] : memref<72x512xf32, #tpu.memory_space<vmem>>, vector<8x512xf32>
    tpu.vector_store %arg6[%c0_4, %c0_5], %6 {strides = array<i32>} : memref<72x512xf32, #tpu.memory_space<vmem>>, vector<8x512xf32>,
    %c16_i32 = arith.constant 16 : i32
    %8 = tpu.dynamic_rotate %1 by %c16_i32 dim 1 : vector<8x512xf32>, i32 -> vector<8x512xf32>
    %9 = vector.extract_strided_slice %2 {offsets = [1, 0], sizes = [1, 512], strides = [1, 1]} : vector<9x512xf32> to vector<1x512xf32>
    %10 = vector.broadcast %9 : vector<1x512xf32> to vector<8x512xf32>
    %11 = arith.mulf %8, %10 : vector<8x512xf32>
    %c8 = arith.constant 8 : index
    %c0_6 = arith.constant 0 : index
    %12 = vector.load %arg6[%c8, %c0_6] : memref<72x512xf32, #tpu.memory_space<vmem>>, vector<8x512xf32>
    tpu.vector_store %arg6[%c8, %c0_6], %11 {strides = array<i32>} : memref<72x512xf32, #tpu.memory_space<vmem>>, vector<8x512xf32>,
    %c15_i32 = arith.constant 15 : i32
    %13 = tpu.dynamic_rotate %1 by %c15_i32 dim 1 : vector<8x512xf32>, i32 -> vector<8x512xf32>
    %14 = vector.extract_strided_slice %2 {offsets = [2, 0], sizes = [1, 512], strides = [1, 1]} : vector<9x512xf32> to vector<1x512xf32>
    %15 = vector.broadcast %14 : vector<1x512xf32> to vector<8x512xf32>
    %16 = arith.mulf %13, %15 : vector<8x512xf32>
    %c16 = arith.constant 16 : index
    %c0_7 = arith.constant 0 : index
    %17 = vector.load %arg6[%c16, %c0_7] : memref<72x512xf32, #tpu.memory_space<vmem>>, vector<8x512xf32>
    tpu.vector_store %arg6[%c16, %c0_7], %16 {strides = array<i32>} : memref<72x512xf32, #tpu.memory_space<vmem>>, vector<8x512xf32>,
    %c1_i32 = arith.constant 1 : i32
    %18 = tpu.dynamic_rotate %1 by %c1_i32 dim 1 : vector<8x512xf32>, i32 -> vector<8x512xf32>
    %19 = vector.extract_strided_slice %2 {offsets = [3, 0], sizes = [1, 512], strides = [1, 1]} : vector<9x512xf32> to vector<1x512xf32>
    %20 = vector.broadcast %19 : vector<1x512xf32> to vector<8x512xf32>
    %21 = arith.mulf %18, %20 : vector<8x512xf32>
    %c24 = arith.constant 24 : index
    %c0_8 = arith.constant 0 : index
    %22 = vector.load %arg6[%c24, %c0_8] : memref<72x512xf32, #tpu.memory_space<vmem>>, vector<8x512xf32>
    tpu.vector_store %arg6[%c24, %c0_8], %21 {strides = array<i32>} : memref<72x512xf32, #tpu.memory_space<vmem>>, vector<8x512xf32>,
    %c32 = arith.constant 32 : index
    %c0_9 = arith.constant 0 : index
    %23 = vector.load %arg6[%c32, %c0_9] : memref<72x512xf32, #tpu.memory_space<vmem>>, vector<8x512xf32>
    tpu.vector_store %arg6[%c32, %c0_9], %1 {strides = array<i32>} : memref<72x512xf32, #tpu.memory_space<vmem>>, vector<8x512xf32>,
    %c511_i32 = arith.constant 511 : i32
    %24 = tpu.dynamic_rotate %1 by %c511_i32 dim 1 : vector<8x512xf32>, i32 -> vector<8x512xf32>
    %25 = vector.extract_strided_slice %2 {offsets = [5, 0], sizes = [1, 512], strides = [1, 1]} : vector<9x512xf32> to vector<1x512xf32>
    %26 = vector.broadcast %25 : vector<1x512xf32> to vector<8x512xf32>
    %27 = arith.mulf %24, %26 : vector<8x512xf32>
    %c40 = arith.constant 40 : index
    %c0_10 = arith.constant 0 : index
    %28 = vector.load %arg6[%c40, %c0_10] : memref<72x512xf32, #tpu.memory_space<vmem>>, vector<8x512xf32>
    tpu.vector_store %arg6[%c40, %c0_10], %27 {strides = array<i32>} : memref<72x512xf32, #tpu.memory_space<vmem>>, vector<8x512xf32>,
    %c497_i32 = arith.constant 497 : i32
    %29 = tpu.dynamic_rotate %1 by %c497_i32 dim 1 : vector<8x512xf32>, i32 -> vector<8x512xf32>
    %30 = vector.extract_strided_slice %2 {offsets = [6, 0], sizes = [1, 512], strides = [1, 1]} : vector<9x512xf32> to vector<1x512xf32>
    %31 = vector.broadcast %30 : vector<1x512xf32> to vector<8x512xf32>
    %32 = arith.mulf %29, %31 : vector<8x512xf32>
    %c48 = arith.constant 48 : index
    %c0_11 = arith.constant 0 : index
    %33 = vector.load %arg6[%c48, %c0_11] : memref<72x512xf32, #tpu.memory_space<vmem>>, vector<8x512xf32>
    tpu.vector_store %arg6[%c48, %c0_11], %32 {strides = array<i32>} : memref<72x512xf32, #tpu.memory_space<vmem>>, vector<8x512xf32>,
    %c496_i32 = arith.constant 496 : i32
    %34 = tpu.dynamic_rotate %1 by %c496_i32 dim 1 : vector<8x512xf32>, i32 -> vector<8x512xf32>
    %35 = vector.extract_strided_slice %2 {offsets = [7, 0], sizes = [1, 512], strides = [1, 1]} : vector<9x512xf32> to vector<1x512xf32>
    %36 = vector.broadcast %35 : vector<1x512xf32> to vector<8x512xf32>
    %37 = arith.mulf %34, %36 : vector<8x512xf32>
    %c56 = arith.constant 56 : index
    %c0_12 = arith.constant 0 : index
    %38 = vector.load %arg6[%c56, %c0_12] : memref<72x512xf32, #tpu.memory_space<vmem>>, vector<8x512xf32>
    tpu.vector_store %arg6[%c56, %c0_12], %37 {strides = array<i32>} : memref<72x512xf32, #tpu.memory_space<vmem>>, vector<8x512xf32>,
    %c495_i32 = arith.constant 495 : i32
    %39 = tpu.dynamic_rotate %1 by %c495_i32 dim 1 : vector<8x512xf32>, i32 -> vector<8x512xf32>
    %40 = vector.extract_strided_slice %2 {offsets = [8, 0], sizes = [1, 512], strides = [1, 1]} : vector<9x512xf32> to vector<1x512xf32>
    %41 = vector.broadcast %40 : vector<1x512xf32> to vector<8x512xf32>
    %42 = arith.mulf %39, %41 : vector<8x512xf32>
    %c64 = arith.constant 64 : index
    %c0_13 = arith.constant 0 : index
    %43 = vector.load %arg6[%c64, %c0_13] : memref<72x512xf32, #tpu.memory_space<vmem>>, vector<8x512xf32>
    tpu.vector_store %arg6[%c64, %c0_13], %42 {strides = array<i32>} : memref<72x512xf32, #tpu.memory_space<vmem>>, vector<8x512xf32>,
    %c0_14 = arith.constant 0 : index
    %c0_15 = arith.constant 0 : index
    %c0_16 = arith.constant 0 : index
    %44 = vector.load %arg2[%c0_14, %c0_15, %c0_16] : memref<3x8x72xf32, #tpu.memory_space<vmem>>, vector<1x8x72xf32>
    %45 = vector.shape_cast %44 : vector<1x8x72xf32> to vector<8x72xf32>
    %c0_17 = arith.constant 0 : index
    %c0_18 = arith.constant 0 : index
    %46 = vector.load %arg6[%c0_17, %c0_18] : memref<72x512xf32, #tpu.memory_space<vmem>>, vector<72x512xf32>
    %cst = arith.constant dense<0.000000e+00> : vector<8x512xf32>
    %47 = tpu.matmul %45, %46, %cst {dimension_numbers = #tpu.dot_dimension_numbers<[1], [0], [0], [1], [0, 0, 1, 1], [], []>} : vector<8x72xf32>, vector<72x512xf32>, vector<8x512xf32> -> vector<8x512xf32>
    %c0_19 = arith.constant 0 : index
    %c0_20 = arith.constant 0 : index
    %c0_21 = arith.constant 0 : index
    %48 = vector.load %arg3[%c0_19, %c0_20, %c0_21] : memref<3x8x1xf32, #tpu.memory_space<vmem>>, vector<1x8x1xf32>
    %49 = vector.shape_cast %48 : vector<1x8x1xf32> to vector<8x1xf32>
    %50 = vector.broadcast %49 : vector<8x1xf32> to vector<8x512xf32>
    %51 = arith.addf %47, %50 : vector<8x512xf32>
    %cst_22 = arith.constant 1.000000e-01 : f32
    %52 = vector.broadcast %cst_22 : f32 to vector<8x512xf32>
    %53 = arith.mulf %52, %51 : vector<8x512xf32>
    %54 = arith.maximumf %51, %53 : vector<8x512xf32>
    %c17_i32_23 = arith.constant 17 : i32
    %55 = tpu.dynamic_rotate %54 by %c17_i32_23 dim 1 : vector<8x512xf32>, i32 -> vector<8x512xf32>
    %56 = vector.extract_strided_slice %2 {offsets = [0, 0], sizes = [1, 512], strides = [1, 1]} : vector<9x512xf32> to vector<1x512xf32>
    %57 = vector.broadcast %56 : vector<1x512xf32> to vector<8x512xf32>
    %58 = arith.mulf %55, %57 : vector<8x512xf32>
    %c0_24 = arith.constant 0 : index
    %c0_25 = arith.constant 0 : index
    %59 = vector.load %arg6[%c0_24, %c0_25] : memref<72x512xf32, #tpu.memory_space<vmem>>, vector<8x512xf32>
    tpu.vector_store %arg6[%c0_24, %c0_25], %58 {strides = array<i32>} : memref<72x512xf32, #tpu.memory_space<vmem>>, vector<8x512xf32>,
    %c16_i32_26 = arith.constant 16 : i32
    %60 = tpu.dynamic_rotate %54 by %c16_i32_26 dim 1 : vector<8x512xf32>, i32 -> vector<8x512xf32>
    %61 = vector.extract_strided_slice %2 {offsets = [1, 0], sizes = [1, 512], strides = [1, 1]} : vector<9x512xf32> to vector<1x512xf32>
    %62 = vector.broadcast %61 : vector<1x512xf32> to vector<8x512xf32>
    %63 = arith.mulf %60, %62 : vector<8x512xf32>
    %c8_27 = arith.constant 8 : index
    %c0_28 = arith.constant 0 : index
    %64 = vector.load %arg6[%c8_27, %c0_28] : memref<72x512xf32, #tpu.memory_space<vmem>>, vector<8x512xf32>
    tpu.vector_store %arg6[%c8_27, %c0_28], %63 {strides = array<i32>} : memref<72x512xf32, #tpu.memory_space<vmem>>, vector<8x512xf32>,
    %c15_i32_29 = arith.constant 15 : i32
    %65 = tpu.dynamic_rotate %54 by %c15_i32_29 dim 1 : vector<8x512xf32>, i32 -> vector<8x512xf32>
    %66 = vector.extract_strided_slice %2 {offsets = [2, 0], sizes = [1, 512], strides = [1, 1]} : vector<9x512xf32> to vector<1x512xf32>
    %67 = vector.broadcast %66 : vector<1x512xf32> to vector<8x512xf32>
    %68 = arith.mulf %65, %67 : vector<8x512xf32>
    %c16_30 = arith.constant 16 : index
    %c0_31 = arith.constant 0 : index
    %69 = vector.load %arg6[%c16_30, %c0_31] : memref<72x512xf32, #tpu.memory_space<vmem>>, vector<8x512xf32>
    tpu.vector_store %arg6[%c16_30, %c0_31], %68 {strides = array<i32>} : memref<72x512xf32, #tpu.memory_space<vmem>>, vector<8x512xf32>,
    %c1_i32_32 = arith.constant 1 : i32
    %70 = tpu.dynamic_rotate %54 by %c1_i32_32 dim 1 : vector<8x512xf32>, i32 -> vector<8x512xf32>
    %71 = vector.extract_strided_slice %2 {offsets = [3, 0], sizes = [1, 512], strides = [1, 1]} : vector<9x512xf32> to vector<1x512xf32>
    %72 = vector.broadcast %71 : vector<1x512xf32> to vector<8x512xf32>
    %73 = arith.mulf %70, %72 : vector<8x512xf32>
    %c24_33 = arith.constant 24 : index
    %c0_34 = arith.constant 0 : index
    %74 = vector.load %arg6[%c24_33, %c0_34] : memref<72x512xf32, #tpu.memory_space<vmem>>, vector<8x512xf32>
    tpu.vector_store %arg6[%c24_33, %c0_34], %73 {strides = array<i32>} : memref<72x512xf32, #tpu.memory_space<vmem>>, vector<8x512xf32>,
    %c32_35 = arith.constant 32 : index
    %c0_36 = arith.constant 0 : index
    %75 = vector.load %arg6[%c32_35, %c0_36] : memref<72x512xf32, #tpu.memory_space<vmem>>, vector<8x512xf32>
    tpu.vector_store %arg6[%c32_35, %c0_36], %54 {strides = array<i32>} : memref<72x512xf32, #tpu.memory_space<vmem>>, vector<8x512xf32>,
    %c511_i32_37 = arith.constant 511 : i32
    %76 = tpu.dynamic_rotate %54 by %c511_i32_37 dim 1 : vector<8x512xf32>, i32 -> vector<8x512xf32>
    %77 = vector.extract_strided_slice %2 {offsets = [5, 0], sizes = [1, 512], strides = [1, 1]} : vector<9x512xf32> to vector<1x512xf32>
    %78 = vector.broadcast %77 : vector<1x512xf32> to vector<8x512xf32>
    %79 = arith.mulf %76, %78 : vector<8x512xf32>
    %c40_38 = arith.constant 40 : index
    %c0_39 = arith.constant 0 : index
    %80 = vector.load %arg6[%c40_38, %c0_39] : memref<72x512xf32, #tpu.memory_space<vmem>>, vector<8x512xf32>
    tpu.vector_store %arg6[%c40_38, %c0_39], %79 {strides = array<i32>} : memref<72x512xf32, #tpu.memory_space<vmem>>, vector<8x512xf32>,
    %c497_i32_40 = arith.constant 497 : i32
    %81 = tpu.dynamic_rotate %54 by %c497_i32_40 dim 1 : vector<8x512xf32>, i32 -> vector<8x512xf32>
    %82 = vector.extract_strided_slice %2 {offsets = [6, 0], sizes = [1, 512], strides = [1, 1]} : vector<9x512xf32> to vector<1x512xf32>
    %83 = vector.broadcast %82 : vector<1x512xf32> to vector<8x512xf32>
    %84 = arith.mulf %81, %83 : vector<8x512xf32>
    %c48_41 = arith.constant 48 : index
    %c0_42 = arith.constant 0 : index
    %85 = vector.load %arg6[%c48_41, %c0_42] : memref<72x512xf32, #tpu.memory_space<vmem>>, vector<8x512xf32>
    tpu.vector_store %arg6[%c48_41, %c0_42], %84 {strides = array<i32>} : memref<72x512xf32, #tpu.memory_space<vmem>>, vector<8x512xf32>,
    %c496_i32_43 = arith.constant 496 : i32
    %86 = tpu.dynamic_rotate %54 by %c496_i32_43 dim 1 : vector<8x512xf32>, i32 -> vector<8x512xf32>
    %87 = vector.extract_strided_slice %2 {offsets = [7, 0], sizes = [1, 512], strides = [1, 1]} : vector<9x512xf32> to vector<1x512xf32>
    %88 = vector.broadcast %87 : vector<1x512xf32> to vector<8x512xf32>
    %89 = arith.mulf %86, %88 : vector<8x512xf32>
    %c56_44 = arith.constant 56 : index
    %c0_45 = arith.constant 0 : index
    %90 = vector.load %arg6[%c56_44, %c0_45] : memref<72x512xf32, #tpu.memory_space<vmem>>, vector<8x512xf32>
    tpu.vector_store %arg6[%c56_44, %c0_45], %89 {strides = array<i32>} : memref<72x512xf32, #tpu.memory_space<vmem>>, vector<8x512xf32>,
    %c495_i32_46 = arith.constant 495 : i32
    %91 = tpu.dynamic_rotate %54 by %c495_i32_46 dim 1 : vector<8x512xf32>, i32 -> vector<8x512xf32>
    %92 = vector.extract_strided_slice %2 {offsets = [8, 0], sizes = [1, 512], strides = [1, 1]} : vector<9x512xf32> to vector<1x512xf32>
    %93 = vector.broadcast %92 : vector<1x512xf32> to vector<8x512xf32>
    %94 = arith.mulf %91, %93 : vector<8x512xf32>
    %c64_47 = arith.constant 64 : index
    %c0_48 = arith.constant 0 : index
    %95 = vector.load %arg6[%c64_47, %c0_48] : memref<72x512xf32, #tpu.memory_space<vmem>>, vector<8x512xf32>
    tpu.vector_store %arg6[%c64_47, %c0_48], %94 {strides = array<i32>} : memref<72x512xf32, #tpu.memory_space<vmem>>, vector<8x512xf32>,
    %c1 = arith.constant 1 : index
    %c0_49 = arith.constant 0 : index
    %c0_50 = arith.constant 0 : index
    %96 = vector.load %arg2[%c1, %c0_49, %c0_50] : memref<3x8x72xf32, #tpu.memory_space<vmem>>, vector<1x8x72xf32>
    %97 = vector.shape_cast %96 : vector<1x8x72xf32> to vector<8x72xf32>
    %c0_51 = arith.constant 0 : index
    %c0_52 = arith.constant 0 : index
    %98 = vector.load %arg6[%c0_51, %c0_52] : memref<72x512xf32, #tpu.memory_space<vmem>>, vector<72x512xf32>
    %cst_53 = arith.constant dense<0.000000e+00> : vector<8x512xf32>
    %99 = tpu.matmul %97, %98, %cst_53 {dimension_numbers = #tpu.dot_dimension_numbers<[1], [0], [0], [1], [0, 0, 1, 1], [], []>} : vector<8x72xf32>, vector<72x512xf32>, vector<8x512xf32> -> vector<8x512xf32>
    %c1_54 = arith.constant 1 : index
    %c0_55 = arith.constant 0 : index
    %c0_56 = arith.constant 0 : index
    %100 = vector.load %arg3[%c1_54, %c0_55, %c0_56] : memref<3x8x1xf32, #tpu.memory_space<vmem>>, vector<1x8x1xf32>
    %101 = vector.shape_cast %100 : vector<1x8x1xf32> to vector<8x1xf32>
    %102 = vector.broadcast %101 : vector<8x1xf32> to vector<8x512xf32>
    %103 = arith.addf %99, %102 : vector<8x512xf32>
    %cst_57 = arith.constant 1.000000e-01 : f32
    %104 = vector.broadcast %cst_57 : f32 to vector<8x512xf32>
    %105 = arith.mulf %104, %103 : vector<8x512xf32>
    %106 = arith.maximumf %103, %105 : vector<8x512xf32>
    %c17_i32_58 = arith.constant 17 : i32
    %107 = tpu.dynamic_rotate %106 by %c17_i32_58 dim 1 : vector<8x512xf32>, i32 -> vector<8x512xf32>
    %108 = vector.extract_strided_slice %2 {offsets = [0, 0], sizes = [1, 512], strides = [1, 1]} : vector<9x512xf32> to vector<1x512xf32>
    %109 = vector.broadcast %108 : vector<1x512xf32> to vector<8x512xf32>
    %110 = arith.mulf %107, %109 : vector<8x512xf32>
    %c0_59 = arith.constant 0 : index
    %c0_60 = arith.constant 0 : index
    %111 = vector.load %arg6[%c0_59, %c0_60] : memref<72x512xf32, #tpu.memory_space<vmem>>, vector<8x512xf32>
    tpu.vector_store %arg6[%c0_59, %c0_60], %110 {strides = array<i32>} : memref<72x512xf32, #tpu.memory_space<vmem>>, vector<8x512xf32>,
    %c16_i32_61 = arith.constant 16 : i32
    %112 = tpu.dynamic_rotate %106 by %c16_i32_61 dim 1 : vector<8x512xf32>, i32 -> vector<8x512xf32>
    %113 = vector.extract_strided_slice %2 {offsets = [1, 0], sizes = [1, 512], strides = [1, 1]} : vector<9x512xf32> to vector<1x512xf32>
    %114 = vector.broadcast %113 : vector<1x512xf32> to vector<8x512xf32>
    %115 = arith.mulf %112, %114 : vector<8x512xf32>
    %c8_62 = arith.constant 8 : index
    %c0_63 = arith.constant 0 : index
    %116 = vector.load %arg6[%c8_62, %c0_63] : memref<72x512xf32, #tpu.memory_space<vmem>>, vector<8x512xf32>
    tpu.vector_store %arg6[%c8_62, %c0_63], %115 {strides = array<i32>} : memref<72x512xf32, #tpu.memory_space<vmem>>, vector<8x512xf32>,
    %c15_i32_64 = arith.constant 15 : i32
    %117 = tpu.dynamic_rotate %106 by %c15_i32_64 dim 1 : vector<8x512xf32>, i32 -> vector<8x512xf32>
    %118 = vector.extract_strided_slice %2 {offsets = [2, 0], sizes = [1, 512], strides = [1, 1]} : vector<9x512xf32> to vector<1x512xf32>
    %119 = vector.broadcast %118 : vector<1x512xf32> to vector<8x512xf32>
    %120 = arith.mulf %117, %119 : vector<8x512xf32>
    %c16_65 = arith.constant 16 : index
    %c0_66 = arith.constant 0 : index
    %121 = vector.load %arg6[%c16_65, %c0_66] : memref<72x512xf32, #tpu.memory_space<vmem>>, vector<8x512xf32>
    tpu.vector_store %arg6[%c16_65, %c0_66], %120 {strides = array<i32>} : memref<72x512xf32, #tpu.memory_space<vmem>>, vector<8x512xf32>,
    %c1_i32_67 = arith.constant 1 : i32
    %122 = tpu.dynamic_rotate %106 by %c1_i32_67 dim 1 : vector<8x512xf32>, i32 -> vector<8x512xf32>
    %123 = vector.extract_strided_slice %2 {offsets = [3, 0], sizes = [1, 512], strides = [1, 1]} : vector<9x512xf32> to vector<1x512xf32>
    %124 = vector.broadcast %123 : vector<1x512xf32> to vector<8x512xf32>
    %125 = arith.mulf %122, %124 : vector<8x512xf32>
    %c24_68 = arith.constant 24 : index
    %c0_69 = arith.constant 0 : index
    %126 = vector.load %arg6[%c24_68, %c0_69] : memref<72x512xf32, #tpu.memory_space<vmem>>, vector<8x512xf32>
    tpu.vector_store %arg6[%c24_68, %c0_69], %125 {strides = array<i32>} : memref<72x512xf32, #tpu.memory_space<vmem>>, vector<8x512xf32>,
    %c32_70 = arith.constant 32 : index
    %c0_71 = arith.constant 0 : index
    %127 = vector.load %arg6[%c32_70, %c0_71] : memref<72x512xf32, #tpu.memory_space<vmem>>, vector<8x512xf32>
    tpu.vector_store %arg6[%c32_70, %c0_71], %106 {strides = array<i32>} : memref<72x512xf32, #tpu.memory_space<vmem>>, vector<8x512xf32>,
    %c511_i32_72 = arith.constant 511 : i32
    %128 = tpu.dynamic_rotate %106 by %c511_i32_72 dim 1 : vector<8x512xf32>, i32 -> vector<8x512xf32>
    %129 = vector.extract_strided_slice %2 {offsets = [5, 0], sizes = [1, 512], strides = [1, 1]} : vector<9x512xf32> to vector<1x512xf32>
    %130 = vector.broadcast %129 : vector<1x512xf32> to vector<8x512xf32>
    %131 = arith.mulf %128, %130 : vector<8x512xf32>
    %c40_73 = arith.constant 40 : index
    %c0_74 = arith.constant 0 : index
    %132 = vector.load %arg6[%c40_73, %c0_74] : memref<72x512xf32, #tpu.memory_space<vmem>>, vector<8x512xf32>
    tpu.vector_store %arg6[%c40_73, %c0_74], %131 {strides = array<i32>} : memref<72x512xf32, #tpu.memory_space<vmem>>, vector<8x512xf32>,
    %c497_i32_75 = arith.constant 497 : i32
    %133 = tpu.dynamic_rotate %106 by %c497_i32_75 dim 1 : vector<8x512xf32>, i32 -> vector<8x512xf32>
    %134 = vector.extract_strided_slice %2 {offsets = [6, 0], sizes = [1, 512], strides = [1, 1]} : vector<9x512xf32> to vector<1x512xf32>
    %135 = vector.broadcast %134 : vector<1x512xf32> to vector<8x512xf32>
    %136 = arith.mulf %133, %135 : vector<8x512xf32>
    %c48_76 = arith.constant 48 : index
    %c0_77 = arith.constant 0 : index
    %137 = vector.load %arg6[%c48_76, %c0_77] : memref<72x512xf32, #tpu.memory_space<vmem>>, vector<8x512xf32>
    tpu.vector_store %arg6[%c48_76, %c0_77], %136 {strides = array<i32>} : memref<72x512xf32, #tpu.memory_space<vmem>>, vector<8x512xf32>,
    %c496_i32_78 = arith.constant 496 : i32
    %138 = tpu.dynamic_rotate %106 by %c496_i32_78 dim 1 : vector<8x512xf32>, i32 -> vector<8x512xf32>
    %139 = vector.extract_strided_slice %2 {offsets = [7, 0], sizes = [1, 512], strides = [1, 1]} : vector<9x512xf32> to vector<1x512xf32>
    %140 = vector.broadcast %139 : vector<1x512xf32> to vector<8x512xf32>
    %141 = arith.mulf %138, %140 : vector<8x512xf32>
    %c56_79 = arith.constant 56 : index
    %c0_80 = arith.constant 0 : index
    %142 = vector.load %arg6[%c56_79, %c0_80] : memref<72x512xf32, #tpu.memory_space<vmem>>, vector<8x512xf32>
    tpu.vector_store %arg6[%c56_79, %c0_80], %141 {strides = array<i32>} : memref<72x512xf32, #tpu.memory_space<vmem>>, vector<8x512xf32>,
    %c495_i32_81 = arith.constant 495 : i32
    %143 = tpu.dynamic_rotate %106 by %c495_i32_81 dim 1 : vector<8x512xf32>, i32 -> vector<8x512xf32>
    %144 = vector.extract_strided_slice %2 {offsets = [8, 0], sizes = [1, 512], strides = [1, 1]} : vector<9x512xf32> to vector<1x512xf32>
    %145 = vector.broadcast %144 : vector<1x512xf32> to vector<8x512xf32>
    %146 = arith.mulf %143, %145 : vector<8x512xf32>
    %c64_82 = arith.constant 64 : index
    %c0_83 = arith.constant 0 : index
    %147 = vector.load %arg6[%c64_82, %c0_83] : memref<72x512xf32, #tpu.memory_space<vmem>>, vector<8x512xf32>
    tpu.vector_store %arg6[%c64_82, %c0_83], %146 {strides = array<i32>} : memref<72x512xf32, #tpu.memory_space<vmem>>, vector<8x512xf32>,
    %c2 = arith.constant 2 : index
    %c0_84 = arith.constant 0 : index
    %c0_85 = arith.constant 0 : index
    %148 = vector.load %arg2[%c2, %c0_84, %c0_85] : memref<3x8x72xf32, #tpu.memory_space<vmem>>, vector<1x8x72xf32>
    %149 = vector.shape_cast %148 : vector<1x8x72xf32> to vector<8x72xf32>
    %c0_86 = arith.constant 0 : index
    %c0_87 = arith.constant 0 : index
    %150 = vector.load %arg6[%c0_86, %c0_87] : memref<72x512xf32, #tpu.memory_space<vmem>>, vector<72x512xf32>
    %cst_88 = arith.constant dense<0.000000e+00> : vector<8x512xf32>
    %151 = tpu.matmul %149, %150, %cst_88 {dimension_numbers = #tpu.dot_dimension_numbers<[1], [0], [0], [1], [0, 0, 1, 1], [], []>} : vector<8x72xf32>, vector<72x512xf32>, vector<8x512xf32> -> vector<8x512xf32>
    %c2_89 = arith.constant 2 : index
    %c0_90 = arith.constant 0 : index
    %c0_91 = arith.constant 0 : index
    %152 = vector.load %arg3[%c2_89, %c0_90, %c0_91] : memref<3x8x1xf32, #tpu.memory_space<vmem>>, vector<1x8x1xf32>
    %153 = vector.shape_cast %152 : vector<1x8x1xf32> to vector<8x1xf32>
    %154 = vector.broadcast %153 : vector<8x1xf32> to vector<8x512xf32>
    %155 = arith.addf %151, %154 : vector<8x512xf32>
    %156 = arith.addf %155, %1 : vector<8x512xf32>
    %cst_92 = arith.constant 1.000000e-01 : f32
    %157 = vector.broadcast %cst_92 : f32 to vector<8x512xf32>
    %158 = arith.mulf %157, %156 : vector<8x512xf32>
    %159 = arith.maximumf %156, %158 : vector<8x512xf32>
    %c0_93 = arith.constant 0 : index
    %c0_94 = arith.constant 0 : index
    %c0_95 = arith.constant 0 : index
    %160 = vector.load %arg5[%c0_93, %c0_94, %c0_95] : memref<1x8x512xf32, #tpu.memory_space<vmem>>, vector<1x8x512xf32>
    %161 = vector.shape_cast %160 : vector<1x8x512xf32> to vector<8x512xf32>
    %162 = vector.shape_cast %159 : vector<8x512xf32> to vector<1x8x512xf32>
    tpu.vector_store %arg5[%c0_93, %c0_94, %c0_95], %162 {strides = array<i32>} : memref<1x8x512xf32, #tpu.memory_space<vmem>>, vector<1x8x512xf32>,
    return
  }
  func.func @transform_0(%arg0: i32) -> (i32, i32, i32) {
    %c0_i32 = arith.constant 0 : i32
    %c0_i32_0 = arith.constant 0 : i32
    %c0_i32_1 = arith.constant 0 : i32
    return %arg0, %c0_i32, %c0_i32_0 : i32, i32, i32
  }
  func.func @transform_1(%arg0: i32) -> (i32, i32, i32) {
    %c0_i32 = arith.constant 0 : i32
    %c0_i32_0 = arith.constant 0 : i32
    %c0_i32_1 = arith.constant 0 : i32
    %c0_i32_2 = arith.constant 0 : i32
    return %c0_i32, %c0_i32_0, %c0_i32_1 : i32, i32, i32
  }
  func.func @transform_2(%arg0: i32) -> (i32, i32, i32) {
    %c0_i32 = arith.constant 0 : i32
    %c0_i32_0 = arith.constant 0 : i32
    %c0_i32_1 = arith.constant 0 : i32
    %c0_i32_2 = arith.constant 0 : i32
    return %c0_i32, %c0_i32_0, %c0_i32_1 : i32, i32, i32
  }
  func.func @transform_3(%arg0: i32) -> (i32, i32) {
    %c0_i32 = arith.constant 0 : i32
    %c0_i32_0 = arith.constant 0 : i32
    %c0_i32_1 = arith.constant 0 : i32
    return %c0_i32, %c0_i32_0 : i32, i32
  }
  func.func @transform_4(%arg0: i32) -> (i32, i32, i32) {
    %c0_i32 = arith.constant 0 : i32
    %c0_i32_0 = arith.constant 0 : i32
    %c0_i32_1 = arith.constant 0 : i32
    return %arg0, %c0_i32, %c0_i32_0 : i32, i32, i32
  }
}

</mosaic_0001>

<bundles_post_ra>
// kernel: tpu_custom_call.1
= control target key start
LH: loop header
LB: loop body
LE: loop exit
PB: predicated region body
PF: predicated region fallthrough
CT: control target
= control target key end

     0   :  { %9 = vsyncpa [#allocation4], 0  ;;  %s2254_s0 = inlined_call_operand.hbm [shape: f32[1,8,512], index: 0, kind: input, shape index: {}]   ;;  %s2255_s1 = inlined_call_operand.vmem [shape: f32[3,8,72], index: 1, kind: input, shape index: {}]   ;;  %s2256_s2 = inlined_call_operand.vmem [shape: f32[3,8,1], index: 2, kind: input, shape index: {}]   ;;  %s2257_s3 = inlined_call_operand.hbm [shape: f32[9,512], index: 3, kind: input, shape index: {}]   ;;  %s2258_s4 = inlined_call_operand.hbm [shape: f32[1,8,512], index: 4, kind: output, shape index: {}]  }
   0x1   :  { %10 = vsyncpa [#allocation7], 0 }
   0x2   :  { %11 = vsyncpa [#allocation5], 0  ;;  %s1506_s15 = smov [#allocation3]   ;;  %s1507_s17 = smov [#allocation6]  }
   0x3   :  { %s18_s16 = sshll.u32 %s1506_s15, 4  ;;  %s31_s18 = sshll.u32 %s1507_s17, 4  ;;  %s19_s16 = int_to_ptr.vmem [resolvable:$true] %s18_s16  ;;  %s1546_s18 = int_to_ptr.vmem [resolvable:$true] %s31_s18 }
   0x4   :  { %s1434_s21 = scalar_lea.hbm %s2254_s0, 512 }
   0x5   :  { %p1435_p0 = scmp.ne.s32.totalorder %s2254_s0, %s1434_s21  ;;  %p1438_p1 = scmp.lt.u32.totalorder %s1434_s21, %s2254_s0 }
   0x7   :  { %p1440_p2 = pnand %p1438_p1, %p1435_p0 }
   0x9   :  { %1443 = shalt.err (!%p1440_p2)
}
   0xa   :  { %s1444_s26 = scalar_lea.vmem %s19_s16, 512  ;;  %p1449_p4 = scmp.lt.s32.totalorder %s19_s16, %s19_s16 }
   0xb   :  { %p1445_p3 = scmp.ne.s32.totalorder %s19_s16, %s1444_s26  ;;  %p1450_p5 = scmp.lt.s32.totalorder %s1444_s26, %s1444_s26 }
   0xd   :  { %p1451_p6 = por %p1450_p5, %p1449_p4 }
   0xf   :  { %p1452_p7 = pnand %p1451_p6, %p1445_p3 }
  0x11   :  { %1455 = shalt.err (!%p1452_p7)
}
  0x12   :  { %21 = dma.hbm_to_vmem [thread:$0]  %s2254_s0, 512, %s19_s16, [#allocation4]  }
  0x13   :  { %s1456_s5 = scalar_lea.hbm %s2257_s3, 1024 }
  0x14   :  { %p1457_p8 = scmp.ne.s32.totalorder %s2257_s3, %s1456_s5  ;;  %p1460_p9 = scmp.lt.u32.totalorder %s1456_s5, %s2257_s3 }
  0x16   :  { %p1462_p10 = pnand %p1460_p9, %p1457_p8 }
  0x18   :  { %1465 = shalt.err (!%p1462_p10)
}
  0x19   :  { %s1466_s10 = scalar_lea.vmem %s1546_s18, 1024  ;;  %p1471_p12 = scmp.lt.s32.totalorder %s1546_s18, %s1546_s18 }
  0x1a   :  { %p1467_p11 = scmp.ne.s32.totalorder %s1546_s18, %s1466_s10  ;;  %p1472_p13 = scmp.lt.s32.totalorder %s1466_s10, %s1466_s10 }
  0x1c   :  { %p1473_p0 = por %p1472_p13, %p1471_p12 }
  0x1e   :  { %p1474_p1 = pnand %p1473_p0, %p1467_p11 }
  0x20   :  { %1477 = shalt.err (!%p1474_p1)
}
  0x21   :  { %s1508_s0 = smov 512   ;;  %s1509_s11 = smov 32  }
  0x22   :  { %37 = dma.hbm_to_vmem [thread:$0]  %s2257_s3, 1024, %s1546_s18, [#allocation7], %s1508_s0, %s1508_s0, %s1509_s11  }
  0x23   :  { %1500 = dma.done.wait [#allocation4], 512  }
  0x24   :  { %1501 = vsyncadd [#allocation4], 4294966784 }
  0x25   :  { %1502 = dma.done.wait [#allocation7], 1024  }
  0x26   :  { %1503 = vsyncadd [#allocation7], 4294966272  ;;  %v1577_v0 = vld [vmem:[#allocation3 + $0x10] sm:$0xff]  ;;  %v1579_v1 = vld [vmem:[#allocation3] sm:$0xff]  ;;  %s1510_s14 = smov 17   ;;  %s1511_s3 = smov 16   ;;  %v64_v7 = vlaneseq }
  0x27   :  { %60 = vrot.lane.b32.xlu1 %v1577_v0, %s1510_s14  ;;  %56 = vrot.lane.b32.xlu0 %v1579_v1, %s1510_s14  ;;  %v1585_v2 = vld [vmem:[#allocation3 + $0x18] sm:$0xff]  ;;  %v1587_v3 = vld [vmem:[#allocation3 + $0x8] sm:$0xff]  ;;  %s1512_s15 = smov 15   ;;  %s1513_s16 = smov 1   ;;  %v1517_v4 = vmov 0.0   ;;  %v1518_v5 = vmov 0  }
  0x28   :  { %s1514_s17 = smov 127   ;;  %s1515_s18 = smov 113   ;;  %469 = vmatprep.mubr.f32.mxu0 %v1517_v4  ;;  %540 = vmatprep.mubr.f32.mxu1 %v1517_v4  ;;  %v395_v6 = vld [vmem:[%s2256_s2] sm:$0xff]  ;;  %v1654_v8 = vshrl.u32 %v64_v7, 7  ;;  %v1656_v11 = vand.u32 127, %v64_v7  ;;  %v1660_v14 = vld [vmem:[#allocation6 + $0x8] sm:$0xff] }
  0x29   :  { %s1516_s19 = smov 112   ;;  %1428 = vset.pattern.permute.xlu0 %v1518_v5  ;;  %1429 = vset.pattern.permute.xlu1 %v1518_v5  ;;  %s1519_s20 = smov 111   ;;  %v1663_v17 = vld [vmem:[#allocation6] sm:$0xff]  ;;  %v1665_v18 = vld [vmem:[#allocation6 + $0x10] sm:$0xff]  ;;  %v1674_v21 = vld [vmem:[#allocation6 + $0x18] sm:$0xff]  ;;  %vm401_vm8 = vcmask 588800  }
  0x2a   :  { %v73_v12 = vsub.s32 0, %v1654_v8  ;;  %v110_v13 = vsub.s32 1, %v1654_v8  ;;  %vm66_vm0 = vcmp.lt.s32.totalorder %v1656_v11, 17  ;;  %vm103_vm1 = vcmp.lt.s32.totalorder %v1656_v11, 16 }
  0x2b   :  { %62 = vrot.lane.b32.xlu1 %v1585_v2, %s1510_s14  ;;  %58 = vrot.lane.b32.xlu0 %v1587_v3, %s1510_s14  ;;  %v147_v54 = vsub.s32 2, %v1654_v8  ;;  %v184_v55 = vsub.s32 3, %v1654_v8  ;;  %vm140_vm2 = vcmp.lt.s32.totalorder %v1656_v11, 15  ;;  %vm177_vm3 = vcmp.lt.s32.totalorder %v1656_v11, 1 }
  0x2c   :  { %v1669_v19 = vrot.slane %v1660_v14, %v73_v12  ;;  %v1672_v20 = vrot.slane %v1660_v14, %v110_v13  ;;  %v1679_v23 = vrot.slane %v1663_v17, %v73_v12  ;;  %v1682_v24 = vrot.slane %v1665_v18, %v73_v12 }
  0x2d   :  { %v1685_v27 = vrot.slane %v1663_v17, %v110_v13  ;;  %v1692_v30 = vrot.slane %v1665_v18, %v110_v13  ;;  %v1695_v31 = vrot.slane %v1674_v21, %v73_v12  ;;  %v1702_v35 = vrot.slane %v1674_v21, %v110_v13 }
  0x2e   :  { %v1722_v58 = vrot.slane %v1660_v14, %v147_v54  ;;  %v1726_v59 = vrot.slane %v1660_v14, %v184_v55  ;;  %v1731_v61 = vrot.slane %v1663_v17, %v147_v54  ;;  %v1734_v62 = vrot.slane %v1665_v18, %v147_v54 }
  0x2f   :  { %97 = vrot.lane.b32.xlu1 %v1587_v3, %s1511_s3  ;;  %95 = vrot.lane.b32.xlu0 %v1579_v1, %s1511_s3  ;;  %v1737_v63 = vrot.slane %v1674_v21, %v147_v54  ;;  %v1747_v12 = vrot.slane %v1665_v18, %v184_v55  ;;  %vm218_vm4 = vcmp.lt.s32.totalorder %v1656_v11, 127  ;;  %vm292_vm5 = vcmp.lt.s32.totalorder %v1656_v11, 112 }
  0x30   :  { %vm255_vm6 = vcmp.lt.s32.totalorder %v1656_v11, 113  ;;  %vm329_vm7 = vcmp.lt.s32.totalorder %v1656_v11, 111 }
  0x33   :  { %101 = vrot.lane.b32.xlu1 %v1585_v2, %s1511_s3  ;;  %99 = vrot.lane.b32.xlu0 %v1577_v0, %s1511_s3 }
  0x37   :  { %134 = vrot.lane.b32.xlu1 %v1587_v3, %s1512_s15  ;;  %132 = vrot.lane.b32.xlu0 %v1579_v1, %s1512_s15 }
  0x3b   :  { %138 = vrot.lane.b32.xlu1 %v1585_v2, %s1512_s15  ;;  %136 = vrot.lane.b32.xlu0 %v1577_v0, %s1512_s15 }
  0x3f   :  { %171 = vrot.lane.b32.xlu1 %v1587_v3, %s1513_s16  ;;  %169 = vrot.lane.b32.xlu0 %v1579_v1, %s1513_s16 }
  0x43   :  { %175 = vrot.lane.b32.xlu1 %v1585_v2, %s1513_s16  ;;  %173 = vrot.lane.b32.xlu0 %v1577_v0, %s1513_s16 }
  0x47   :  { %212 = vrot.lane.b32.xlu1 %v1587_v3, %s1514_s17  ;;  %210 = vrot.lane.b32.xlu0 %v1579_v1, %s1514_s17 }
  0x4b   :  { %216 = vrot.lane.b32.xlu1 %v1585_v2, %s1514_s17  ;;  %214 = vrot.lane.b32.xlu0 %v1577_v0, %s1514_s17 }
  0x4f   :  { %249 = vrot.lane.b32.xlu1 %v1587_v3, %s1515_s18  ;;  %247 = vrot.lane.b32.xlu0 %v1579_v1, %s1515_s18 }
  0x53   :  { %253 = vrot.lane.b32.xlu1 %v1585_v2, %s1515_s18  ;;  %251 = vrot.lane.b32.xlu0 %v1577_v0, %s1515_s18 }
  0x57   :  { %286 = vrot.lane.b32.xlu1 %v1587_v3, %s1516_s19  ;;  %284 = vrot.lane.b32.xlu0 %v1579_v1, %s1516_s19 }
  0x5b   :  { %290 = vrot.lane.b32.xlu1 %v1585_v2, %s1516_s19  ;;  %288 = vrot.lane.b32.xlu0 %v1577_v0, %s1516_s19 }
  0x5f   :  { %323 = vrot.lane.b32.xlu1 %v1587_v3, %s1519_s20  ;;  %321 = vrot.lane.b32.xlu0 %v1579_v1, %s1519_s20 }
  0x63   :  { %327 = vrot.lane.b32.xlu1 %v1585_v2, %s1519_s20  ;;  %325 = vrot.lane.b32.xlu0 %v1577_v0, %s1519_s20 }
  0x67   :  { %398 = vperm.xlu0 %1428, %v395_v6  }
  0x99   :  { %v61_v9 = vpop.permute.xlu1 %60  ;;  %v57_v10 = vpop.permute.xlu0 %56 }
  0x9d   :  { %v63_v15 = vpop.permute.xlu1 %62  ;;  %v59_v16 = vpop.permute.xlu0 %58 }
  0x9e   :  { %v69_v22 = vsel %vm66_vm0, %v57_v10, %v59_v16  ;;  %v70_v28 = vsel %vm66_vm0, %v63_v15, %v57_v10  ;;  %v68_v32 = vsel %vm66_vm0, %v59_v16, %v61_v9  ;;  %v67_v36 = vsel %vm66_vm0, %v61_v9, %v63_v15 }
  0x9f   :  { %v88_v33 = vmul.f32 %v1669_v19, %v69_v22  ;;  %v87_v37 = vmul.f32 %v1679_v23, %v70_v28  ;;  %v89_v41 = vmul.f32 %v1682_v24, %v68_v32  ;;  %v90_v47 = vmul.f32 %v1695_v31, %v67_v36 }
  0xa0   :  { %v1744_v10 = vrot.slane %v1663_v17, %v184_v55  ;;  %v1754_v22 = vrot.slane %v1674_v21, %v184_v55 }
  0xa1   :  { %v98_v25 = vpop.permute.xlu1 %97  ;;  %v96_v26 = vpop.permute.xlu0 %95 }
  0xa2   :  { %v106_v29 = vsel %vm103_vm1, %v96_v26, %v98_v25 }
  0xa3   :  { %v125_v34 = vmul.f32 %v1672_v20, %v106_v29 }
  0xa5   :  { %v102_v38 = vpop.permute.xlu1 %101  ;;  %v100_v39 = vpop.permute.xlu0 %99  ;;  %v1317_v40 = vpack.c.bf16 %v125_v34, %v88_v33  ;;  %v225_v33 = vsub.s32 5, %v1654_v8 }
  0xa6   :  { %v107_v42 = vsel %vm103_vm1, %v102_v38, %v96_v26  ;;  %v104_v43 = vsel %vm103_vm1, %v100_v39, %v102_v38  ;;  %v105_v44 = vsel %vm103_vm1, %v98_v25, %v100_v39 }
  0xa7   :  { %v124_v45 = vmul.f32 %v1685_v27, %v107_v42  ;;  %v126_v46 = vmul.f32 %v1692_v30, %v105_v44  ;;  %1318 = vmatprep.subr.bf16.mxu0 %v1317_v40  ;;  %v127_v48 = vmul.f32 %v1702_v35, %v104_v43 }
  0xa9   :  { %v135_v49 = vpop.permute.xlu1 %134  ;;  %v133_v50 = vpop.permute.xlu0 %132  ;;  %v1319_v51 = vpack.c.bf16 %v124_v45, %v87_v37  ;;  %v1333_v52 = vpack.c.bf16 %v127_v48, %v90_v47  ;;  %v1335_v53 = vpack.c.bf16 %v126_v46, %v89_v41  ;;  %v1773_v48 = vrot.slane %v1663_v17, %v225_v33 }
  0xaa   :  { %v143_v60 = vsel %vm140_vm2, %v133_v50, %v135_v49 }
  0xab   :  { %1320 = vmatpush1.bf16.msra.mxu0 %v1319_v51  ;;  %1334 = vmatprep.subr.bf16.mxu1 %v1333_v52  ;;  %v162_v13 = vmul.f32 %v1722_v58, %v143_v60  ;;  %v1781_v51 = vrot.slane %v1660_v14, %v225_v33  ;;  %v1784_v52 = vrot.slane %v1665_v18, %v225_v33 }
  0xac   :  { %1336 = vmatpush1.bf16.msra.mxu1 %v1335_v53 }
  0xad   :  { %v139_v56 = vpop.permute.xlu1 %138  ;;  %v137_v57 = vpop.permute.xlu0 %136 }
  0xae   :  { %v144_v7 = vsel %vm140_vm2, %v139_v56, %v133_v50  ;;  %v142_v15 = vsel %vm140_vm2, %v135_v49, %v137_v57  ;;  %v141_v25 = vsel %vm140_vm2, %v137_v57, %v139_v56  ;;  %v1776_v49 = vrot.slane %v1674_v21, %v225_v33 }
  0xaf   :  { %v161_v26 = vmul.f32 %v1731_v61, %v144_v7  ;;  %v163_v34 = vmul.f32 %v1734_v62, %v142_v15  ;;  %v164_v39 = vmul.f32 %v1737_v63, %v141_v25  ;;  %v262_v33 = vsub.s32 6, %v1654_v8 }
  0xb1   :  { %v172_v5 = vpop.permute.xlu1 %171  ;;  %v170_v6 = vpop.permute.xlu0 %169 }
  0xb2   :  { %v180_v9 = vsel %vm177_vm3, %v170_v6, %v172_v5 }
  0xb3   :  { %v199_v16 = vmul.f32 %v1726_v59, %v180_v9 }
  0xb5   :  { %v176_v28 = vpop.permute.xlu1 %175  ;;  %v174_v29 = vpop.permute.xlu0 %173  ;;  %v1321_v32 = vpack.c.bf16 %v199_v16, %v162_v13 }
  0xb6   :  { %v181_v36 = vsel %vm177_vm3, %v176_v28, %v170_v6  ;;  %v178_v37 = vsel %vm177_vm3, %v174_v29, %v176_v28  ;;  %v179_v38 = vsel %vm177_vm3, %v172_v5, %v174_v29 }
  0xb7   :  { %v198_v40 = vmul.f32 %v1744_v10, %v181_v36  ;;  %v200_v41 = vmul.f32 %v1747_v12, %v179_v38  ;;  %v201_v42 = vmul.f32 %v1754_v22, %v178_v37  ;;  %1322 = vmatprep.subr.bf16.mxu0 %v1321_v32  ;;  %v299_v32 = vsub.s32 7, %v1654_v8 }
  0xb8   :  { %v1813_v36 = vrot.slane %v1665_v18, %v262_v33 }
  0xb9   :  { %v213_v43 = vpop.permute.xlu1 %212  ;;  %v211_v44 = vpop.permute.xlu0 %210  ;;  %v1323_v45 = vpack.c.bf16 %v198_v40, %v161_v26  ;;  %v1337_v46 = vpack.c.bf16 %v201_v42, %v164_v39  ;;  %v1339_v47 = vpack.c.bf16 %v200_v41, %v163_v34  ;;  %v1818_v37 = vrot.slane %v1663_v17, %v299_v32 }
  0xba   :  { %v221_v50 = vsel %vm218_vm4, %v211_v44, %v213_v43  ;;  %v1823_v39 = vrot.slane %v1674_v21, %v299_v32  ;;  %v1826_v40 = vrot.slane %v1660_v14, %v299_v32  ;;  %v1829_v41 = vrot.slane %v1665_v18, %v299_v32 }
  0xbb   :  { %1324 = vmatpush1.bf16.msra.mxu0 %v1323_v45  ;;  %1338 = vmatprep.subr.bf16.mxu1 %v1337_v46  ;;  %v239_v55 = vmul.f32 %v1773_v48, %v221_v50  ;;  %v1832_v42 = vrot.slane %v1663_v17, %v262_v33 }
  0xbc   :  { %1340 = vmatpush1.bf16.msra.mxu1 %v1339_v47 }
  0xbd   :  { %v217_v53 = vpop.permute.xlu1 %216  ;;  %v215_v54 = vpop.permute.xlu0 %214  ;;  %v1327_v26 = vpack.c.bf16 %v239_v55, %v1579_v1 }
  0xbe   :  { %v222_v56 = vsel %vm218_vm4, %v217_v53, %v211_v44  ;;  %v219_v57 = vsel %vm218_vm4, %v215_v54, %v217_v53  ;;  %v220_v60 = vsel %vm218_vm4, %v213_v43, %v215_v54 }
  0xbf   :  { %v242_v5 = vmul.f32 %v1776_v49, %v222_v56  ;;  %v240_v6 = vmul.f32 %v1781_v51, %v220_v60  ;;  %v241_v7 = vmul.f32 %v1784_v52, %v219_v57 }
  0xc1   :  { %v250_v9 = vpop.permute.xlu1 %249  ;;  %v248_v13 = vpop.permute.xlu0 %247  ;;  %v1325_v15 = vpack.c.bf16 %v240_v6, %v1587_v3  ;;  %v1341_v16 = vpack.c.bf16 %v242_v5, %v1585_v2  ;;  %v1343_v25 = vpack.c.bf16 %v241_v7, %v1577_v0  ;;  %v1805_v2 = vrot.slane %v1674_v21, %v262_v33 }
  0xc2   :  { %v1808_v0 = vrot.slane %v1660_v14, %v262_v33  ;;  %v258_v44 = vsel %vm255_vm6, %v248_v13, %v250_v9 }
  0xc3   :  { %1326 = vmatprep.subr.bf16.mxu0 %v1325_v15  ;;  %1342 = vmatprep.subr.bf16.mxu1 %v1341_v16  ;;  %v276_v57 = vmul.f32 %v1832_v42, %v258_v44  ;;  %v1853_v15 = vld [vmem:[#allocation6 + $0x38] ss:$0 sm:$0xff]  ;;  %v1855_v16 = vld [vmem:[#allocation6 + $0x28] ss:$0 sm:$0xff]  ;;  %v358_v44 = vld [vmem:[%s2255_s1] sm:$0xff] }
  0xc4   :  { %1328 = vmatpush1.bf16.msra.mxu0 %v1327_v26  ;;  %1344 = vmatpush1.bf16.msra.mxu1 %v1343_v25  ;;  %v1857_v25 = vld [vmem:[#allocation6 + $0x30] ss:$0 sm:$0xff]  ;;  %v1859_v26 = vld [vmem:[#allocation6 + $0x20] ss:$0 sm:$0xff] }
  0xc5   :  { %v254_v28 = vpop.permute.xlu1 %253  ;;  %v252_v29 = vpop.permute.xlu0 %251 }
  0xc6   :  { %v259_v34 = vsel %vm255_vm6, %v254_v28, %v248_v13  ;;  %v257_v8 = vsel %vm255_vm6, %v250_v9, %v252_v29  ;;  %v256_v43 = vsel %vm255_vm6, %v252_v29, %v254_v28 }
  0xc7   :  { %v279_v45 = vmul.f32 %v1805_v2, %v259_v34  ;;  %v277_v21 = vmul.f32 %v1808_v0, %v257_v8  ;;  %v278_v53 = vmul.f32 %v1813_v36, %v256_v43 }
  0xc9   :  { %v287_v1 = vpop.permute.xlu1 %286  ;;  %v285_v3 = vpop.permute.xlu0 %284 }
  0xca   :  { %v295_v38 = vsel %vm292_vm5, %v285_v3, %v287_v1 }
  0xcb   :  { %v313_v14 = vmul.f32 %v1818_v37, %v295_v38 }
  0xcd   :  { %v291_v46 = vpop.permute.xlu1 %290  ;;  %v289_v47 = vpop.permute.xlu0 %288  ;;  %v1331_v13 = vpack.c.bf16 %v313_v14, %v276_v57 }
  0xce   :  { %v296_v18 = vsel %vm292_vm5, %v291_v46, %v285_v3  ;;  %v293_v17 = vsel %vm292_vm5, %v289_v47, %v291_v46  ;;  %v294_v50 = vsel %vm292_vm5, %v287_v1, %v289_v47 }
  0xcf   :  { %v316_v54 = vmul.f32 %v1823_v39, %v296_v18  ;;  %v314_v55 = vmul.f32 %v1826_v40, %v294_v50  ;;  %v315_v56 = vmul.f32 %v1829_v41, %v293_v17 }
  0xd1   :  { %v324_v60 = vpop.permute.xlu1 %323  ;;  %v322_v5 = vpop.permute.xlu0 %321  ;;  %v1329_v6 = vpack.c.bf16 %v314_v55, %v277_v21  ;;  %v1345_v7 = vpack.c.bf16 %v316_v54, %v279_v45  ;;  %v1347_v9 = vpack.c.bf16 %v315_v56, %v278_v53 }
  0xd2   :  { %v332_v28 = vsel %vm329_vm7, %v322_v5, %v324_v60 }
  0xd3   :  { %1330 = vmatprep.subr.bf16.mxu0 %v1329_v6  ;;  %1346 = vmatprep.subr.bf16.mxu1 %v1345_v7  ;;  %v350_v43 = vmul.f32 %v1859_v26, %v332_v28 }
  0xd4   :  { %1332 = vmatpush1.bf16.msra.mxu0 %v1331_v13  ;;  %1348 = vmatpush1.bf16.msra.mxu1 %v1347_v9  ;;  %v1310_v9 = vld [vmem:[%s2256_s2 + $0x8] sm:$0xff] }
  0xd5   :  { %v328_v29 = vpop.permute.xlu1 %327  ;;  %v326_v32 = vpop.permute.xlu0 %325 }
  0xd6   :  { %v333_v33 = vsel %vm329_vm7, %v328_v29, %v322_v5  ;;  %v330_v1 = vsel %vm329_vm7, %v326_v32, %v328_v29  ;;  %v331_v3 = vsel %vm329_vm7, %v324_v60, %v326_v32 }
  0xd7   :  { %v353_v34 = vmul.f32 %v1853_v15, %v333_v33  ;;  %v351_v8 = vmul.f32 %v1855_v16, %v331_v3  ;;  %v352_v38 = vmul.f32 %v1857_v25, %v330_v1 }
  0xd9   :  { %421 = vmatprep.subr.mxu0 %v351_v8  ;;  %492 = vmatprep.subr.mxu1 %v353_v34 }
  0xda   :  { %422 = vmatpush1.msra.mxu0 %v350_v43  ;;  %493 = vmatpush1.msra.mxu1 %v352_v38 }
  0xdb   :  { %1307 = vmatmul.mubr.msk.f32.vlgmr.msra.gmra.mrb[0].mxu0 %vm401_vm8, %v358_v44  ;;  %1308 = vmatmul.mubr.msk.f32.vlgmr.msra.gmra.mrb[0].mxu1 %vm401_vm8, %v358_v44 }
  0xdc   :  { %831 = vmatprep.mubr.f32.mxu0 %v1517_v4  ;;  %902 = vmatprep.mubr.f32.mxu1 %v1517_v4 }
  0xe6   :  { %v399_v45 = vpop.permute.xlu0 %398 }
 0x1ae   :  { %v471_v21 = vpop.f32.mrb[0].mxu0  ;;  %v542_v46 = vpop.f32.mrb[0].mxu1 }
 0x1af   :  { %v472_v47 = vadd.f32 %v471_v21, %v399_v45  ;;  %v543_v14 = vadd.f32 %v542_v46, %v399_v45  ;;  %v473_v18 = vpop.f32.mrb[1].mxu0  ;;  %v544_v17 = vpop.f32.mrb[1].mxu1 }
 0x1b0   :  { %v474_v50 = vadd.f32 %v473_v18, %v399_v45  ;;  %v545_v60 = vadd.f32 %v544_v17, %v399_v45 }
 0x1b1   :  { %v547_v53 = vmul.f32 0.1, %v472_v47  ;;  %v549_v54 = vmul.f32 0.1, %v543_v14 }
 0x1b2   :  { %v548_v57 = vmul.f32 0.1, %v474_v50  ;;  %v550_v6 = vmul.f32 0.1, %v545_v60 }
 0x1b3   :  { %v1880_v55 = vmax.f32 %v472_v47, %v547_v53  ;;  %v1882_v56 = vmax.f32 %v543_v14, %v549_v54 }
 0x1b4   :  { %v1888_v5 = vmax.f32 %v474_v50, %v548_v57  ;;  %v1894_v7 = vmax.f32 %v545_v60, %v550_v6 }
 0x1b5   :  { %559 = vrot.lane.b32.xlu0 %v1882_v56, %s1510_s14  ;;  %555 = vrot.lane.b32.xlu1 %v1880_v55, %s1510_s14 }
 0x1b9   :  { %575 = vrot.lane.b32.xlu0 %v1880_v55, %s1511_s3  ;;  %557 = vrot.lane.b32.xlu1 %v1888_v5, %s1510_s14 }
 0x1bd   :  { %579 = vrot.lane.b32.xlu0 %v1882_v56, %s1511_s3  ;;  %561 = vrot.lane.b32.xlu1 %v1894_v7, %s1510_s14 }
 0x1c1   :  { %595 = vrot.lane.b32.xlu0 %v1880_v55, %s1512_s15  ;;  %577 = vrot.lane.b32.xlu1 %v1888_v5, %s1511_s3 }
 0x1c5   :  { %599 = vrot.lane.b32.xlu0 %v1882_v56, %s1512_s15  ;;  %581 = vrot.lane.b32.xlu1 %v1894_v7, %s1511_s3 }
 0x1c9   :  { %615 = vrot.lane.b32.xlu0 %v1880_v55, %s1513_s16  ;;  %597 = vrot.lane.b32.xlu1 %v1888_v5, %s1512_s15 }
 0x1cd   :  { %619 = vrot.lane.b32.xlu0 %v1882_v56, %s1513_s16  ;;  %601 = vrot.lane.b32.xlu1 %v1894_v7, %s1512_s15 }
 0x1d1   :  { %639 = vrot.lane.b32.xlu0 %v1880_v55, %s1514_s17  ;;  %617 = vrot.lane.b32.xlu1 %v1888_v5, %s1513_s16 }
 0x1d5   :  { %643 = vrot.lane.b32.xlu0 %v1882_v56, %s1514_s17  ;;  %621 = vrot.lane.b32.xlu1 %v1894_v7, %s1513_s16 }
 0x1d9   :  { %659 = vrot.lane.b32.xlu0 %v1880_v55, %s1515_s18  ;;  %641 = vrot.lane.b32.xlu1 %v1888_v5, %s1514_s17 }
 0x1dd   :  { %663 = vrot.lane.b32.xlu0 %v1882_v56, %s1515_s18  ;;  %645 = vrot.lane.b32.xlu1 %v1894_v7, %s1514_s17 }
 0x1e1   :  { %679 = vrot.lane.b32.xlu0 %v1880_v55, %s1516_s19  ;;  %661 = vrot.lane.b32.xlu1 %v1888_v5, %s1515_s18 }
 0x1e5   :  { %683 = vrot.lane.b32.xlu0 %v1882_v56, %s1516_s19  ;;  %665 = vrot.lane.b32.xlu1 %v1894_v7, %s1515_s18 }
 0x1e9   :  { %699 = vrot.lane.b32.xlu0 %v1880_v55, %s1519_s20  ;;  %681 = vrot.lane.b32.xlu1 %v1888_v5, %s1516_s19 }
 0x1ed   :  { %703 = vrot.lane.b32.xlu0 %v1882_v56, %s1519_s20  ;;  %685 = vrot.lane.b32.xlu1 %v1894_v7, %s1516_s19 }
 0x1f1   :  { %761 = vperm.xlu0 %1428, %v1310_v9   ;;  %701 = vrot.lane.b32.xlu1 %v1888_v5, %s1519_s20 }
 0x1f5   :  { %705 = vrot.lane.b32.xlu1 %v1894_v7, %s1519_s20 }
 0x227   :  { %v560_v13 = vpop.permute.xlu0 %559  ;;  %v556_v28 = vpop.permute.xlu1 %555 }
 0x22b   :  { %v576_v29 = vpop.permute.xlu0 %575  ;;  %v558_v32 = vpop.permute.xlu1 %557 }
 0x22c   :  { %v565_v3 = vsel %vm66_vm0, %v556_v28, %v558_v32  ;;  %v564_v47 = vsel %vm66_vm0, %v558_v32, %v560_v13 }
 0x22d   :  { %v568_v43 = vmul.f32 %v565_v3, %v1669_v19 }
 0x22f   :  { %v580_v33 = vpop.permute.xlu0 %579  ;;  %v562_v1 = vpop.permute.xlu1 %561 }
 0x230   :  { %v563_v21 = vsel %vm66_vm0, %v560_v13, %v562_v1  ;;  %v566_v46 = vsel %vm66_vm0, %v562_v1, %v556_v28  ;;  %v569_v13 = vmul.f32 %v564_v47, %v1682_v24 }
 0x231   :  { %v567_v57 = vmul.f32 %v566_v46, %v1679_v23  ;;  %v570_v60 = vmul.f32 %v563_v21, %v1695_v31 }
 0x233   :  { %v596_v34 = vpop.permute.xlu0 %595  ;;  %v578_v8 = vpop.permute.xlu1 %577 }
 0x234   :  { %v585_v38 = vsel %vm103_vm1, %v576_v29, %v578_v8  ;;  %v584_v44 = vsel %vm103_vm1, %v578_v8, %v580_v33 }
 0x235   :  { %v588_v45 = vmul.f32 %v585_v38, %v1672_v20  ;;  %v589_v50 = vmul.f32 %v584_v44, %v1692_v30 }
 0x237   :  { %v600_v14 = vpop.permute.xlu0 %599  ;;  %v582_v18 = vpop.permute.xlu1 %581  ;;  %v1349_v17 = vpack.c.bf16 %v588_v45, %v568_v43  ;;  %v1367_v8 = vpack.c.bf16 %v589_v50, %v569_v13 }
 0x238   :  { %v583_v53 = vsel %vm103_vm1, %v580_v33, %v582_v18  ;;  %v586_v54 = vsel %vm103_vm1, %v582_v18, %v576_v29 }
 0x239   :  { %v587_v6 = vmul.f32 %v586_v54, %v1685_v27  ;;  %v590_v9 = vmul.f32 %v583_v53, %v1702_v35  ;;  %1350 = vmatprep.subr.bf16.mxu0 %v1349_v17 }
 0x23b   :  { %v1351_v28 = vpack.c.bf16 %v587_v6, %v567_v57  ;;  %v616_v32 = vpop.permute.xlu0 %615  ;;  %v598_v1 = vpop.permute.xlu1 %597  ;;  %v1365_v3 = vpack.c.bf16 %v590_v9, %v570_v60 }
 0x23c   :  { %v605_v38 = vsel %vm140_vm2, %v596_v34, %v598_v1  ;;  %v604_v50 = vsel %vm140_vm2, %v598_v1, %v600_v14 }
 0x23d   :  { %1352 = vmatpush1.bf16.msra.mxu0 %v1351_v28  ;;  %1366 = vmatprep.subr.bf16.mxu1 %v1365_v3  ;;  %v608_v21 = vmul.f32 %v605_v38, %v1722_v58 }
 0x23e   :  { %1368 = vmatpush1.bf16.msra.mxu1 %v1367_v8 }
 0x23f   :  { %v620_v29 = vpop.permute.xlu0 %619  ;;  %v602_v33 = vpop.permute.xlu1 %601 }
 0x240   :  { %v603_v18 = vsel %vm140_vm2, %v600_v14, %v602_v33  ;;  %v606_v17 = vsel %vm140_vm2, %v602_v33, %v596_v34  ;;  %v609_v14 = vmul.f32 %v604_v50, %v1734_v62 }
 0x241   :  { %v607_v13 = vmul.f32 %v606_v17, %v1731_v61  ;;  %v610_v28 = vmul.f32 %v603_v18, %v1737_v63 }
 0x243   :  { %v640_v43 = vpop.permute.xlu0 %639  ;;  %v618_v44 = vpop.permute.xlu1 %617 }
 0x244   :  { %v625_v45 = vsel %vm177_vm3, %v616_v32, %v618_v44  ;;  %v624_v46 = vsel %vm177_vm3, %v618_v44, %v620_v29 }
 0x245   :  { %v628_v47 = vmul.f32 %v625_v45, %v1726_v59  ;;  %v629_v60 = vmul.f32 %v624_v46, %v1747_v12 }
 0x247   :  { %v644_v53 = vpop.permute.xlu0 %643  ;;  %v622_v54 = vpop.permute.xlu1 %621  ;;  %v1353_v57 = vpack.c.bf16 %v628_v47, %v608_v21  ;;  %v1371_v44 = vpack.c.bf16 %v629_v60, %v609_v14 }
 0x248   :  { %v623_v6 = vsel %vm177_vm3, %v620_v29, %v622_v54  ;;  %v626_v9 = vsel %vm177_vm3, %v622_v54, %v616_v32 }
 0x249   :  { %v627_v34 = vmul.f32 %v626_v9, %v1744_v10  ;;  %v630_v3 = vmul.f32 %v623_v6, %v1754_v22  ;;  %1354 = vmatprep.subr.bf16.mxu0 %v1353_v57 }
 0x24b   :  { %v1355_v1 = vpack.c.bf16 %v627_v34, %v607_v13  ;;  %v660_v8 = vpop.permute.xlu0 %659  ;;  %v642_v33 = vpop.permute.xlu1 %641  ;;  %v1369_v38 = vpack.c.bf16 %v630_v3, %v610_v28 }
 0x24c   :  { %v648_v29 = vsel %vm218_vm4, %v642_v33, %v644_v53  ;;  %v649_v32 = vsel %vm218_vm4, %v640_v43, %v642_v33 }
 0x24d   :  { %v651_v45 = vmul.f32 %v649_v32, %v1773_v48  ;;  %v652_v21 = vmul.f32 %v648_v29, %v1781_v51  ;;  %1356 = vmatpush1.bf16.msra.mxu0 %v1355_v1  ;;  %1370 = vmatprep.subr.bf16.mxu1 %v1369_v38 }
 0x24e   :  { %1372 = vmatpush1.bf16.msra.mxu1 %v1371_v44 }
 0x24f   :  { %v1359_v46 = vpack.c.bf16 %v651_v45, %v1880_v55  ;;  %v664_v47 = vpop.permute.xlu0 %663  ;;  %v646_v18 = vpop.permute.xlu1 %645  ;;  %v1357_v17 = vpack.c.bf16 %v652_v21, %v1888_v5 }
 0x250   :  { %v647_v50 = vsel %vm218_vm4, %v644_v53, %v646_v18  ;;  %v650_v54 = vsel %vm218_vm4, %v646_v18, %v640_v43 }
 0x251   :  { %v653_v57 = vmul.f32 %v647_v50, %v1784_v52  ;;  %v654_v60 = vmul.f32 %v650_v54, %v1776_v49  ;;  %1358 = vmatprep.subr.bf16.mxu0 %v1357_v17 }
 0x252   :  { %1360 = vmatpush1.bf16.msra.mxu0 %v1359_v46 }
 0x253   :  { %v1375_v6 = vpack.c.bf16 %v653_v57, %v1882_v56  ;;  %v680_v9 = vpop.permute.xlu0 %679  ;;  %v662_v55 = vpop.permute.xlu1 %661  ;;  %v1373_v13 = vpack.c.bf16 %v654_v60, %v1894_v7 }
 0x254   :  { %v668_v53 = vsel %vm255_vm6, %v662_v55, %v664_v47  ;;  %v669_v43 = vsel %vm255_vm6, %v660_v8, %v662_v55 }
 0x255   :  { %1374 = vmatprep.subr.bf16.mxu1 %v1373_v13  ;;  %v671_v14 = vmul.f32 %v669_v43, %v1832_v42  ;;  %v672_v7 = vmul.f32 %v668_v53, %v1808_v0 }
 0x256   :  { %1376 = vmatpush1.bf16.msra.mxu1 %v1375_v6 }
 0x257   :  { %v684_v5 = vpop.permute.xlu0 %683  ;;  %v666_v28 = vpop.permute.xlu1 %665 }
 0x258   :  { %v667_v44 = vsel %vm255_vm6, %v664_v47, %v666_v28  ;;  %v670_v29 = vsel %vm255_vm6, %v666_v28, %v660_v8  ;;  %v1309_v28 = vld [vmem:[%s2255_s1 + $0x8] sm:$0xff] }
 0x259   :  { %v673_v17 = vmul.f32 %v667_v44, %v1813_v36  ;;  %v674_v50 = vmul.f32 %v670_v29, %v1805_v2 }
 0x25b   :  { %v682_v34 = vpop.permute.xlu1 %681  ;;  %v700_v1 = vpop.permute.xlu0 %699 }
 0x25c   :  { %v688_v3 = vsel %vm292_vm5, %v682_v34, %v684_v5  ;;  %v689_v56 = vsel %vm292_vm5, %v680_v9, %v682_v34 }
 0x25d   :  { %v691_v33 = vmul.f32 %v689_v56, %v1818_v37  ;;  %v692_v38 = vmul.f32 %v688_v3, %v1826_v40 }
 0x25f   :  { %v1363_v32 = vpack.c.bf16 %v691_v33, %v671_v14  ;;  %v686_v45 = vpop.permute.xlu1 %685  ;;  %v1361_v21 = vpack.c.bf16 %v692_v38, %v672_v7  ;;  %v704_v8 = vpop.permute.xlu0 %703 }
 0x260   :  { %v687_v46 = vsel %vm292_vm5, %v684_v5, %v686_v45  ;;  %v690_v18 = vsel %vm292_vm5, %v686_v45, %v680_v9 }
 0x261   :  { %v693_v54 = vmul.f32 %v687_v46, %v1829_v41  ;;  %v694_v47 = vmul.f32 %v690_v18, %v1823_v39  ;;  %1362 = vmatprep.subr.bf16.mxu0 %v1361_v21 }
 0x262   :  { %1364 = vmatpush1.bf16.msra.mxu0 %v1363_v32 }
 0x263   :  { %v1379_v57 = vpack.c.bf16 %v693_v54, %v673_v17  ;;  %v702_v60 = vpop.permute.xlu1 %701  ;;  %v1377_v6 = vpack.c.bf16 %v694_v47, %v674_v50 }
 0x264   :  { %v708_v55 = vsel %vm329_vm7, %v702_v60, %v704_v8  ;;  %v709_v9 = vsel %vm329_vm7, %v700_v1, %v702_v60 }
 0x265   :  { %v711_v13 = vmul.f32 %v1859_v26, %v709_v9  ;;  %v712_v5 = vmul.f32 %v1855_v16, %v708_v55  ;;  %1378 = vmatprep.subr.bf16.mxu1 %v1377_v6 }
 0x266   :  { %1380 = vmatpush1.bf16.msra.mxu1 %v1379_v57 }
 0x267   :  { %783 = vmatprep.subr.mxu0 %v712_v5  ;;  %v706_v53 = vpop.permute.xlu1 %705 }
 0x268   :  { %v707_v43 = vsel %vm329_vm7, %v704_v8, %v706_v53  ;;  %v710_v34 = vsel %vm329_vm7, %v706_v53, %v700_v1  ;;  %784 = vmatpush1.msra.mxu0 %v711_v13  ;;  %v1314_v8 = vld [vmem:[%s2256_s2 + $0x10] sm:$0xff] }
 0x269   :  { %v713_v3 = vmul.f32 %v1857_v25, %v707_v43  ;;  %v714_v56 = vmul.f32 %v1853_v15, %v710_v34  ;;  %1311 = vmatmul.mubr.msk.f32.vlgmr.msra.gmra.mrb[2].mxu0 %vm401_vm8, %v1309_v28 }
 0x26a   :  { %1193 = vmatprep.mubr.f32.mxu0 %v1517_v4 }
 0x26b   :  { %854 = vmatprep.subr.mxu1 %v714_v56 }
 0x26c   :  { %855 = vmatpush1.msra.mxu1 %v713_v3 }
 0x26d   :  { %1312 = vmatmul.mubr.msk.f32.vlgmr.msra.gmra.mrb[2].mxu1 %vm401_vm8, %v1309_v28 }
 0x26e   :  { %1264 = vmatprep.mubr.f32.mxu1 %v1517_v4 }
 0x270   :  { %v762_v14 = vpop.permute.xlu0 %761 }
 0x33c   :  { %v833_v7 = vpop.f32.mrb[2].mxu0 }
 0x33d   :  { %v834_v33 = vadd.f32 %v833_v7, %v762_v14  ;;  %v835_v38 = vpop.f32.mrb[3].mxu0 }
 0x33e   :  { %v836_v1 = vadd.f32 %v835_v38, %v762_v14 }
 0x33f   :  { %v909_v44 = vmul.f32 0.1, %v834_v33 }
 0x340   :  { %v910_v29 = vmul.f32 0.1, %v836_v1  ;;  %v904_v32 = vpop.f32.mrb[2].mxu1 }
 0x341   :  { %v2062_v45 = vmax.f32 %v834_v33, %v909_v44  ;;  %v905_v21 = vadd.f32 %v904_v32, %v762_v14  ;;  %v906_v46 = vpop.f32.mrb[3].mxu1 }
 0x342   :  { %v2064_v18 = vmax.f32 %v836_v1, %v910_v29  ;;  %v907_v17 = vadd.f32 %v906_v46, %v762_v14 }
 0x343   :  { %v911_v50 = vmul.f32 0.1, %v905_v21  ;;  %917 = vrot.lane.b32.xlu1 %v2062_v45, %s1510_s14 }
 0x344   :  { %v912_v4 = vmul.f32 0.1, %v907_v17  ;;  %919 = vrot.lane.b32.xlu0 %v2064_v18, %s1510_s14 }
 0x345   :  { %v2070_v54 = vmax.f32 %v905_v21, %v911_v50 }
 0x346   :  { %v2072_v47 = vmax.f32 %v907_v17, %v912_v4 }
 0x347   :  { %921 = vrot.lane.b32.xlu1 %v2070_v54, %s1510_s14 }
 0x348   :  { %923 = vrot.lane.b32.xlu0 %v2072_v47, %s1510_s14 }
 0x34b   :  { %937 = vrot.lane.b32.xlu1 %v2062_v45, %s1511_s3 }
 0x34c   :  { %939 = vrot.lane.b32.xlu0 %v2064_v18, %s1511_s3 }
 0x34f   :  { %941 = vrot.lane.b32.xlu1 %v2070_v54, %s1511_s3 }
 0x350   :  { %943 = vrot.lane.b32.xlu0 %v2072_v47, %s1511_s3 }
 0x353   :  { %957 = vrot.lane.b32.xlu1 %v2062_v45, %s1512_s15 }
 0x354   :  { %959 = vrot.lane.b32.xlu0 %v2064_v18, %s1512_s15 }
 0x357   :  { %961 = vrot.lane.b32.xlu1 %v2070_v54, %s1512_s15 }
 0x358   :  { %963 = vrot.lane.b32.xlu0 %v2072_v47, %s1512_s15 }
 0x35b   :  { %977 = vrot.lane.b32.xlu1 %v2062_v45, %s1513_s16 }
 0x35c   :  { %979 = vrot.lane.b32.xlu0 %v2064_v18, %s1513_s16 }
 0x35f   :  { %981 = vrot.lane.b32.xlu1 %v2070_v54, %s1513_s16 }
 0x360   :  { %983 = vrot.lane.b32.xlu0 %v2072_v47, %s1513_s16 }
 0x363   :  { %1001 = vrot.lane.b32.xlu1 %v2062_v45, %s1514_s17 }
 0x364   :  { %1003 = vrot.lane.b32.xlu0 %v2064_v18, %s1514_s17 }
 0x367   :  { %1005 = vrot.lane.b32.xlu1 %v2070_v54, %s1514_s17 }
 0x368   :  { %1007 = vrot.lane.b32.xlu0 %v2072_v47, %s1514_s17 }
 0x36b   :  { %1021 = vrot.lane.b32.xlu1 %v2062_v45, %s1515_s18 }
 0x36c   :  { %1023 = vrot.lane.b32.xlu0 %v2064_v18, %s1515_s18 }
 0x36f   :  { %1025 = vrot.lane.b32.xlu1 %v2070_v54, %s1515_s18 }
 0x370   :  { %1027 = vrot.lane.b32.xlu0 %v2072_v47, %s1515_s18 }
 0x373   :  { %1041 = vrot.lane.b32.xlu1 %v2062_v45, %s1516_s19 }
 0x374   :  { %1043 = vrot.lane.b32.xlu0 %v2064_v18, %s1516_s19 }
 0x377   :  { %1045 = vrot.lane.b32.xlu1 %v2070_v54, %s1516_s19 }
 0x378   :  { %1047 = vrot.lane.b32.xlu0 %v2072_v47, %s1516_s19 }
 0x37b   :  { %1061 = vrot.lane.b32.xlu1 %v2062_v45, %s1519_s20 }
 0x37c   :  { %1063 = vrot.lane.b32.xlu0 %v2064_v18, %s1519_s20 }
 0x37f   :  { %1065 = vrot.lane.b32.xlu1 %v2070_v54, %s1519_s20 }
 0x380   :  { %1067 = vrot.lane.b32.xlu0 %v2072_v47, %s1519_s20 }
 0x383   :  { %1123 = vperm.xlu1 %1429, %v1314_v8  }
 0x3b5   :  { %v918_v57 = vpop.permute.xlu1 %917 }
 0x3b6   :  { %v920_v60 = vpop.permute.xlu0 %919 }
 0x3b7   :  { %v927_v9 = vsel %vm66_vm0, %v918_v57, %v920_v60 }
 0x3b8   :  { %v930_v53 = vmul.f32 %v927_v9, %v1669_v19 }
 0x3b9   :  { %v922_v6 = vpop.permute.xlu1 %921 }
 0x3ba   :  { %v924_v55 = vpop.permute.xlu0 %923  ;;  %v926_v14 = vsel %vm66_vm0, %v920_v60, %v922_v6 }
 0x3bb   :  { %v925_v34 = vsel %vm66_vm0, %v922_v6, %v924_v55  ;;  %v928_v3 = vsel %vm66_vm0, %v924_v55, %v918_v57  ;;  %v931_v46 = vmul.f32 %v926_v14, %v1682_v24 }
 0x3bc   :  { %v929_v44 = vmul.f32 %v928_v3, %v1679_v23  ;;  %v932_v29 = vmul.f32 %v925_v34, %v1695_v31 }
 0x3bd   :  { %v938_v13 = vpop.permute.xlu1 %937 }
 0x3be   :  { %v940_v5 = vpop.permute.xlu0 %939 }
 0x3bf   :  { %v947_v28 = vsel %vm103_vm1, %v938_v13, %v940_v5 }
 0x3c0   :  { %v950_v43 = vmul.f32 %v947_v28, %v1672_v20 }
 0x3c1   :  { %v942_v56 = vpop.permute.xlu1 %941 }
 0x3c2   :  { %v946_v7 = vsel %vm103_vm1, %v940_v5, %v942_v56  ;;  %v944_v33 = vpop.permute.xlu0 %943  ;;  %v1381_v38 = vpack.c.bf16 %v950_v43, %v930_v53 }
 0x3c3   :  { %v951_v1 = vmul.f32 %v946_v7, %v1692_v30  ;;  %v945_v19 = vsel %vm103_vm1, %v942_v56, %v944_v33  ;;  %v948_v20 = vsel %vm103_vm1, %v944_v33, %v938_v13 }
 0x3c4   :  { %v949_v32 = vmul.f32 %v948_v20, %v1685_v27  ;;  %v952_v21 = vmul.f32 %v945_v19, %v1702_v35  ;;  %1382 = vmatprep.subr.bf16.mxu0 %v1381_v38 }
 0x3c5   :  { %v958_v17 = vpop.permute.xlu1 %957  ;;  %v1399_v8 = vpack.c.bf16 %v951_v1, %v931_v46 }
 0x3c6   :  { %v1383_v50 = vpack.c.bf16 %v949_v32, %v929_v44  ;;  %v960_v30 = vpop.permute.xlu0 %959  ;;  %v1397_v4 = vpack.c.bf16 %v952_v21, %v932_v29 }
 0x3c7   :  { %v967_v23 = vsel %vm140_vm2, %v958_v17, %v960_v30 }
 0x3c8   :  { %1384 = vmatpush1.bf16.msra.mxu0 %v1383_v50  ;;  %1398 = vmatprep.subr.bf16.mxu1 %v1397_v4  ;;  %v970_v24 = vmul.f32 %v967_v23, %v1722_v58 }
 0x3c9   :  { %1400 = vmatpush1.bf16.msra.mxu1 %v1399_v8  ;;  %v962_v57 = vpop.permute.xlu1 %961 }
 0x3ca   :  { %v964_v60 = vpop.permute.xlu0 %963  ;;  %v966_v5 = vsel %vm140_vm2, %v960_v30, %v962_v57 }
 0x3cb   :  { %v965_v55 = vsel %vm140_vm2, %v962_v57, %v964_v60  ;;  %v968_v9 = vsel %vm140_vm2, %v964_v60, %v958_v17  ;;  %v971_v33 = vmul.f32 %v966_v5, %v1734_v62 }
 0x3cc   :  { %v969_v3 = vmul.f32 %v968_v9, %v1731_v61  ;;  %v972_v56 = vmul.f32 %v965_v55, %v1737_v63 }
 0x3cd   :  { %v978_v31 = vpop.permute.xlu1 %977 }
 0x3ce   :  { %v980_v27 = vpop.permute.xlu0 %979 }
 0x3cf   :  { %v987_v35 = vsel %vm177_vm3, %v978_v31, %v980_v27 }
 0x3d0   :  { %v990_v6 = vmul.f32 %v987_v35, %v1726_v59 }
 0x3d1   :  { %v982_v13 = vpop.permute.xlu1 %981 }
 0x3d2   :  { %v986_v28 = vsel %vm177_vm3, %v980_v27, %v982_v13  ;;  %v984_v53 = vpop.permute.xlu0 %983  ;;  %v1385_v43 = vpack.c.bf16 %v990_v6, %v970_v24 }
 0x3d3   :  { %v991_v34 = vmul.f32 %v986_v28, %v1747_v12  ;;  %v985_v58 = vsel %vm177_vm3, %v982_v13, %v984_v53  ;;  %v988_v59 = vsel %vm177_vm3, %v984_v53, %v978_v31 }
 0x3d4   :  { %v989_v14 = vmul.f32 %v988_v59, %v1744_v10  ;;  %v992_v7 = vmul.f32 %v985_v58, %v1754_v22  ;;  %1386 = vmatprep.subr.bf16.mxu0 %v1385_v43 }
 0x3d5   :  { %v1002_v38 = vpop.permute.xlu1 %1001  ;;  %v1403_v20 = vpack.c.bf16 %v991_v34, %v971_v33 }
 0x3d6   :  { %v1387_v1 = vpack.c.bf16 %v989_v14, %v969_v3  ;;  %v1004_v12 = vpop.permute.xlu0 %1003  ;;  %v1401_v19 = vpack.c.bf16 %v992_v7, %v972_v56 }
 0x3d7   :  { %v1011_v44 = vsel %vm218_vm4, %v1002_v38, %v1004_v12 }
 0x3d8   :  { %1388 = vmatpush1.bf16.msra.mxu0 %v1387_v1  ;;  %1402 = vmatprep.subr.bf16.mxu1 %v1401_v19  ;;  %v1013_v63 = vmul.f32 %v1011_v44, %v1773_v48 }
 0x3d9   :  { %1404 = vmatpush1.bf16.msra.mxu1 %v1403_v20  ;;  %v1006_v61 = vpop.permute.xlu1 %1005  ;;  %v1430_v20 = vld [vmem:[#allocation3] sm:$0xff] }
 0x3da   :  { %v1010_v10 = vsel %vm218_vm4, %v1004_v12, %v1006_v61  ;;  %v1008_v22 = vpop.permute.xlu0 %1007  ;;  %v1391_v48 = vpack.c.bf16 %v1013_v63, %v2062_v45  ;;  %v1431_v63 = vld [vmem:[#allocation3 + $0x8] sm:$0xff] }
 0x3db   :  { %v1014_v62 = vmul.f32 %v1010_v10, %v1781_v51  ;;  %v1009_v29 = vsel %vm218_vm4, %v1006_v61, %v1008_v22  ;;  %v1012_v32 = vsel %vm218_vm4, %v1008_v22, %v1002_v38  ;;  %v1313_v38 = vld [vmem:[%s2255_s1 + $0x10] sm:$0xff]  ;;  %s1520_s1 = smov [#allocation8]  }
 0x3dc   :  { %v1015_v21 = vmul.f32 %v1009_v29, %v1784_v52  ;;  %v1016_v46 = vmul.f32 %v1012_v32, %v1776_v49  ;;  %v1432_v22 = vld [vmem:[#allocation3 + $0x10] sm:$0xff]  ;;  %v1433_v32 = vld [vmem:[#allocation3 + $0x18] sm:$0xff]  ;;  %s1293_s6 = sshll.u32 %s1520_s1, 4  ;;  %s1294_s6 = int_to_ptr.vmem [resolvable:$true] %s1293_s6 }
 0x3dd   :  { %v1022_v17 = vpop.permute.xlu1 %1021  ;;  %v1389_v50 = vpack.c.bf16 %v1014_v62, %v2064_v18  ;;  %s1478_s7 = scalar_lea.vmem %s1294_s6, 512  ;;  %p1483_p3 = scmp.lt.s32.totalorder %s1294_s6, %s1294_s6 }
 0x3de   :  { %v1407_v30 = vpack.c.bf16 %v1015_v21, %v2070_v54  ;;  %v1024_v4 = vpop.permute.xlu0 %1023  ;;  %v1405_v51 = vpack.c.bf16 %v1016_v46, %v2072_v47  ;;  %p1479_p2 = scmp.ne.s32.totalorder %s1294_s6, %s1478_s7  ;;  %p1484_p4 = scmp.lt.s32.totalorder %s1478_s7, %s1478_s7 }
 0x3df   :  { %1390 = vmatprep.subr.bf16.mxu0 %v1389_v50  ;;  %v1031_v49 = vsel %vm255_vm6, %v1022_v17, %v1024_v4 }
 0x3e0   :  { %1392 = vmatpush1.bf16.msra.mxu0 %v1391_v48  ;;  %1406 = vmatprep.subr.bf16.mxu1 %v1405_v51  ;;  %v1033_v31 = vmul.f32 %v1031_v49, %v1832_v42  ;;  %p1485_p5 = por %p1484_p4, %p1483_p3 }
 0x3e1   :  { %1408 = vmatpush1.bf16.msra.mxu1 %v1407_v30  ;;  %v1026_v8 = vpop.permute.xlu1 %1025 }
 0x3e2   :  { %v1028_v57 = vpop.permute.xlu0 %1027  ;;  %v1030_v45 = vsel %vm255_vm6, %v1024_v4, %v1026_v8  ;;  %p1486_p6 = pnand %p1485_p5, %p1479_p2 }
 0x3e3   :  { %v1029_v54 = vsel %vm255_vm6, %v1026_v8, %v1028_v57  ;;  %v1032_v47 = vsel %vm255_vm6, %v1028_v57, %v1022_v17  ;;  %v1034_v6 = vmul.f32 %v1030_v45, %v1808_v0 }
 0x3e4   :  { %v1035_v5 = vmul.f32 %v1029_v54, %v1813_v36  ;;  %v1036_v42 = vmul.f32 %v1032_v47, %v1805_v2 }
 0x3e5   :  { %v1042_v60 = vpop.permute.xlu1 %1041 }
 0x3e6   :  { %v1044_v52 = vpop.permute.xlu0 %1043 }
 0x3e7   :  { %v1051_v18 = vsel %vm292_vm5, %v1042_v60, %v1044_v52 }
 0x3e8   :  { %v1053_v27 = vmul.f32 %v1051_v18, %v1818_v37 }
 0x3e9   :  { %v1046_v23 = vpop.permute.xlu1 %1045 }
 0x3ea   :  { %v1050_v35 = vsel %vm292_vm5, %v1044_v52, %v1046_v23  ;;  %v1048_v24 = vpop.permute.xlu0 %1047  ;;  %v1395_v34 = vpack.c.bf16 %v1053_v27, %v1033_v31 }
 0x3eb   :  { %v1054_v55 = vmul.f32 %v1050_v35, %v1826_v40  ;;  %v1049_v9 = vsel %vm292_vm5, %v1046_v23, %v1048_v24  ;;  %v1052_v13 = vsel %vm292_vm5, %v1048_v24, %v1042_v60 }
 0x3ec   :  { %v1055_v37 = vmul.f32 %v1049_v9, %v1829_v41  ;;  %v1056_v28 = vmul.f32 %v1052_v13, %v1823_v39 }
 0x3ed   :  { %v1062_v53 = vpop.permute.xlu1 %1061  ;;  %v1393_v43 = vpack.c.bf16 %v1054_v55, %v1034_v6 }
 0x3ee   :  { %v1411_v0 = vpack.c.bf16 %v1055_v37, %v1035_v5  ;;  %v1064_v58 = vpop.permute.xlu0 %1063  ;;  %v1409_v40 = vpack.c.bf16 %v1056_v28, %v1036_v42 }
 0x3ef   :  { %1394 = vmatprep.subr.bf16.mxu0 %v1393_v43  ;;  %v1071_v59 = vsel %vm329_vm7, %v1062_v53, %v1064_v58 }
 0x3f0   :  { %1396 = vmatpush1.bf16.msra.mxu0 %v1395_v34  ;;  %1410 = vmatprep.subr.bf16.mxu1 %v1409_v40  ;;  %v1073_v14 = vmul.f32 %v1859_v26, %v1071_v59 }
 0x3f1   :  { %1412 = vmatpush1.bf16.msra.mxu1 %v1411_v0  ;;  %v1066_v36 = vpop.permute.xlu1 %1065 }
 0x3f2   :  { %v1070_v2 = vsel %vm329_vm7, %v1064_v58, %v1066_v36  ;;  %v1068_v41 = vpop.permute.xlu0 %1067 }
 0x3f3   :  { %v1074_v39 = vmul.f32 %v1855_v16, %v1070_v2  ;;  %v1069_v3 = vsel %vm329_vm7, %v1066_v36, %v1068_v41  ;;  %v1072_v56 = vsel %vm329_vm7, %v1068_v41, %v1062_v53 }
 0x3f4   :  { %v1075_v7 = vmul.f32 %v1857_v25, %v1069_v3  ;;  %v1076_v33 = vmul.f32 %v1853_v15, %v1072_v56 }
 0x3f5   :  { %1145 = vmatprep.subr.mxu0 %v1074_v39 }
 0x3f6   :  { %1146 = vmatpush1.msra.mxu0 %v1073_v14  ;;  %1216 = vmatprep.subr.mxu1 %v1076_v33 }
 0x3f7   :  { %1315 = vmatmul.mubr.msk.f32.vlgmr.msra.gmra.mrb[4].mxu0 %vm401_vm8, %v1313_v38  ;;  %1217 = vmatpush1.msra.mxu1 %v1075_v7 }
 0x3f8   :  { %1316 = vmatmul.mubr.msk.f32.vlgmr.msra.gmra.mrb[4].mxu1 %vm401_vm8, %v1313_v38 }
 0x402   :  { %v1124_v11 = vpop.permute.xlu1 %1123 }
 0x4ca   :  { %v1195_v16 = vpop.f32.mrb[4].mxu0 }
 0x4cb   :  { %v1196_v1 = vadd.f32 %v1195_v16, %v1124_v11  ;;  %v1197_v26 = vpop.f32.mrb[5].mxu0  ;;  %v1266_v12 = vpop.f32.mrb[4].mxu1 }
 0x4cc   :  { %v1198_v25 = vadd.f32 %v1197_v26, %v1124_v11  ;;  %v1267_v19 = vadd.f32 %v1266_v12, %v1124_v11  ;;  %v1268_v15 = vpop.f32.mrb[5].mxu1 }
 0x4cd   :  { %v1271_v44 = vadd.f32 %v1430_v20, %v1196_v1  ;;  %v1269_v61 = vadd.f32 %v1268_v15, %v1124_v11 }
 0x4ce   :  { %v1272_v10 = vadd.f32 %v1431_v63, %v1198_v25  ;;  %v1273_v62 = vadd.f32 %v1432_v22, %v1267_v19 }
 0x4cf   :  { %v1275_v29 = vmul.f32 0.1, %v1271_v44  ;;  %v1274_v21 = vadd.f32 %v1433_v32, %v1269_v61 }
 0x4d0   :  { %v1276_v46 = vmul.f32 0.1, %v1272_v10  ;;  %v1277_v17 = vmul.f32 0.1, %v1273_v62 }
 0x4d1   :  { %v1279_v50 = vmax.f32 %v1271_v44, %v1275_v29  ;;  %v1278_v48 = vmul.f32 0.1, %v1274_v21 }
 0x4d2   :  { %v1280_v30 = vmax.f32 %v1272_v10, %v1276_v46  ;;  %v1281_v4 = vmax.f32 %v1273_v62, %v1277_v17 }
 0x4d3   :  { %1283 = vst [vmem:[#allocation8] sm:$0xff] %v1279_v50  ;;  %v1282_v51 = vmax.f32 %v1274_v21, %v1278_v48 }
 0x4d4   :  { %1284 = vst [vmem:[#allocation8 + $0x8] sm:$0xff] %v1280_v30  ;;  %1285 = vst [vmem:[#allocation8 + $0x10] sm:$0xff] %v1281_v4 }
 0x4d5   :  { %1286 = vst [vmem:[#allocation8 + $0x18] sm:$0xff] %v1282_v51 }
 0x4d6   :  { %1489 = shalt.err (!%p1486_p6)
}
 0x4d7   :  { %s1490_s10 = scalar_lea.hbm %s2258_s4, 512 }
 0x4d8   :  { %p1491_p7 = scmp.ne.s32.totalorder %s2258_s4, %s1490_s10  ;;  %p1494_p8 = scmp.lt.u32.totalorder %s1490_s10, %s2258_s4 }
 0x4da   :  { %p1496_p9 = pnand %p1494_p8, %p1491_p7 }
 0x4dc   :  { %1499 = shalt.err (!%p1496_p9)
}
 0x4dd   :  { %1296 = dma.vmem_to_hbm [thread:$0]  %s1294_s6, 512, %s2258_s4, [#allocation5]  }
 0x4de   :  { %1504 = dma.done.wait [#allocation5], 512  }
 0x4df   :  { %1505 = vsyncadd [#allocation5], 4294966784 }
 0x4e0   :  { %1300 = vsyncpa [#allocation4], 1 }
 0x4e1   :  { %1301 = vsyncpa [#allocation7], 1 }
 0x4e2   :  { %1302 = vsyncpa [#allocation5], 1 }

</bundles_post_ra>
